<compile_context>
chip_gen: v6e
topology: v6e:2x2x1
jax: 0.10.0
libtpu: 0.0.40
codegen_flags: <defaults>
</compile_context>

<pallas_src>
from functools import partial

import jax
import jax.numpy as jnp
from jax.experimental import pallas as pl
from jax.experimental.pallas import tpu as pltpu  # noqa: F401  (kept for tuning hooks)

EPS = 1e-6  # LayerNorm eps (partial(nn.LayerNorm, eps=1e-06))
_SQRT_2_OVER_PI = 0.7978845608028654


# ---------------------------------------------------------------------------
# In-kernel math helpers (trace into the Pallas kernel body)
# ---------------------------------------------------------------------------
def _layernorm(x, gamma, beta):
    mean = jnp.mean(x, axis=-1, keepdims=True)
    xc = x - mean
    var = jnp.mean(xc * xc, axis=-1, keepdims=True)
    inv = jax.lax.rsqrt(var + EPS)
    return xc * inv * gamma + beta


def _gelu(x):
    # tanh-approx GELU (max abs dev vs exact erf GELU ~3e-4); tanh -> EUP slot.
    return 0.5 * x * (1.0 + jnp.tanh(_SQRT_2_OVER_PI * (x + 0.044715 * x * x * x)))


# ---------------------------------------------------------------------------
# Kernel (single invocation: whole (B, S, D) problem resident in VMEM)
# ---------------------------------------------------------------------------
def height_block_kernel(x_ref,
                        g1_ref, b1_ref,
                        w_in_ref, b_in_ref,
                        w_out_ref, b_out_ref,
                        wa1_ref, ba1_ref, wa2_ref, ba2_ref,
                        g2_ref, b2_ref,
                        wm1_ref, bm1_ref, wm2_ref, bm2_ref,
                        o_ref,
                        *, num_heads):
    B, S, D = x_ref.shape
    dh = D // num_heads
    scale = 1.0 / (dh ** 0.5)
    bf16 = jnp.bfloat16

    x3 = x_ref[...].astype(jnp.float32)           # (B, S, D)
    xf = x3.reshape(B * S, D)                     # flatten batch for linears

    # ---- norm1 + QKV projection (one matmul over the whole batch) ----
    h = _layernorm(xf, g1_ref[...], b1_ref[...])
    qkv = jnp.dot(h.astype(bf16), w_in_ref[...],
                  preferred_element_type=jnp.float32) + b_in_ref[...]
    q = qkv[:, 0:D].reshape(B, S, D)
    k = qkv[:, D:2 * D].reshape(B, S, D)
    v = qkv[:, 2 * D:3 * D].reshape(B, S, D)

    # ---- multi-head self-attention, heads as adjacent column blocks ----
    # Per-head scores/softmax/PV are batched over B; head outputs are
    # concatenated once and projected with a single out_proj matmul.
    head_outs = []
    for hd in range(num_heads):
        lo, hi = hd * dh, (hd + 1) * dh
        qh = q[:, :, lo:hi].astype(bf16)          # (B, S, dh)
        kh = k[:, :, lo:hi].astype(bf16)
        vh = v[:, :, lo:hi].astype(bf16)
        s = jnp.einsum('bqd,bkd->bqk', qh, kh,
                       preferred_element_type=jnp.float32) * scale
        s = s - jnp.max(s, axis=-1, keepdims=True)
        p = jnp.exp(s)
        p = p * pl.reciprocal(jnp.sum(p, axis=-1, keepdims=True), approx=True)
        out_h = jnp.einsum('bqk,bkd->bqd', p.astype(bf16), vh,
                           preferred_element_type=jnp.float32)
        head_outs.append(out_h)

    attn_cat = jnp.concatenate(head_outs, axis=-1).reshape(B * S, D)
    attn_proj = jnp.dot(attn_cat.astype(bf16), w_out_ref[...],
                        preferred_element_type=jnp.float32) + b_out_ref[...]
    attn_out = xf + attn_proj                     # residual 1

    # ---- additional_mlp: Linear -> GELU -> Linear (+ residual) ----
    a = _gelu(jnp.dot(attn_out.astype(bf16), wa1_ref[...],
                      preferred_element_type=jnp.float32) + ba1_ref[...])
    a = jnp.dot(a.astype(bf16), wa2_ref[...],
                preferred_element_type=jnp.float32) + ba2_ref[...]
    attn_out = attn_out + a                       # residual 2

    # ---- norm2 + mlp: Linear -> GELU -> Linear (+ residual) ----
    h2 = _layernorm(attn_out, g2_ref[...], b2_ref[...])
    m = _gelu(jnp.dot(h2.astype(bf16), wm1_ref[...],
                      preferred_element_type=jnp.float32) + bm1_ref[...])
    m = jnp.dot(m.astype(bf16), wm2_ref[...],
                preferred_element_type=jnp.float32) + bm2_ref[...]
    out = attn_out + m                            # residual 3

    o_ref[...] = out.reshape(B, S, D).astype(o_ref.dtype)


# ---------------------------------------------------------------------------
# Wrapper
# ---------------------------------------------------------------------------
def height_block_pallas(x, p, num_heads):
    B, S, D = x.shape
    bf16 = jnp.bfloat16
    # Weights are shipped to the kernel in bf16 (MXU operands, half the DMA);
    # LayerNorm params and biases stay f32 (added after the f32 accumulate).
    params = [
        p["g1"], p["b1"],
        p["w_in"].astype(bf16), p["b_in"],
        p["w_out"].astype(bf16), p["b_out"],
        p["wa1"].astype(bf16), p["ba1"], p["wa2"].astype(bf16), p["ba2"],
        p["g2"], p["b2"],
        p["wm1"].astype(bf16), p["bm1"], p["wm2"].astype(bf16), p["bm2"],
    ]
    # No grid: single invocation, everything resident in VMEM (few KB here).
    # At real DINOv2 shapes, add a sequence-tile grid axis and keep weights
    # resident with constant index_maps / pl.Buffered(1).
    return pl.pallas_call(
        partial(height_block_kernel, num_heads=num_heads),
        out_shape=jax.ShapeDtypeStruct((B, S, D), x.dtype),
    )(x, *params)


# ---------------------------------------------------------------------------
# Pure-JAX reference (exact f32 / erf-GELU, matching the torch module)
# ---------------------------------------------------------------------------
def height_block_ref(x, p, num_heads):
    def ln(z, g, b):
        mean = z.mean(-1, keepdims=True)
        var = ((z - mean) ** 2).mean(-1, keepdims=True)
        return (z - mean) / jnp.sqrt(var + EPS) * g + b

    gelu = lambda z: jax.nn.gelu(z, approximate=False)
    B, S, D = x.shape
    dh = D // num_heads

    h = ln(x, p["g1"], p["b1"])
    qkv = h @ p["w_in"] + p["b_in"]
    q, k, v = qkv[..., :D], qkv[..., D:2 * D], qkv[..., 2 * D:]
    q = q.reshape(B, S, num_heads, dh).transpose(0, 2, 1, 3)
    k = k.reshape(B, S, num_heads, dh).transpose(0, 2, 1, 3)
    v = v.reshape(B, S, num_heads, dh).transpose(0, 2, 1, 3)
    s = jnp.einsum("bhqd,bhkd->bhqk", q, k) / jnp.sqrt(dh)
    attn = jax.nn.softmax(s, axis=-1)
    o = jnp.einsum("bhqk,bhkd->bhqd", attn, v).transpose(0, 2, 1, 3).reshape(B, S, D)
    attn_out = x + o @ p["w_out"] + p["b_out"]

    a = gelu(attn_out @ p["wa1"] + p["ba1"]) @ p["wa2"] + p["ba2"]
    attn_out = attn_out + a

    h2 = ln(attn_out, p["g2"], p["b2"])
    m = gelu(h2 @ p["wm1"] + p["bm1"]) @ p["wm2"] + p["bm2"]
    return attn_out + m


# ---------------------------------------------------------------------------
# Main
# ---------------------------------------------------------------------------
if __name__ == "__main__":
    B, S, D = 2, 8, 32          # batch, seq, embed_dim
    num_heads = 4
    mlp_ratio = 4.0
    H = int(D * mlp_ratio)      # 128

    key = jax.random.PRNGKey(0)
    ks = jax.random.split(key, 16)

    def w(k, shape, std=0.05):
        return (std * jax.random.normal(k, shape)).astype(jnp.float32)

    # Weights stored as (in_features, out_features); biases as (1, out_features).
    params = dict(
        g1=jnp.ones((1, D), jnp.float32),  b1=jnp.zeros((1, D), jnp.float32),
        w_in=w(ks[0], (D, 3 * D)),         b_in=w(ks[1], (1, 3 * D)),
        w_out=w(ks[2], (D, D)),            b_out=w(ks[3], (1, D)),
        wa1=w(ks[4], (D, D)),              ba1=w(ks[5], (1, D)),
        wa2=w(ks[6], (D, D)),              ba2=w(ks[7], (1, D)),
        g2=jnp.ones((1, D), jnp.float32),  b2=jnp.zeros((1, D), jnp.float32),
        wm1=w(ks[8], (D, H)),              bm1=w(ks[9], (1, H)),
        wm2=w(ks[10], (H, D)),             bm2=w(ks[11], (1, D)),
    )

    x = jax.random.normal(ks[12], (B, S, D), dtype=jnp.float32)

    out = height_block_pallas(x, params, num_heads)
    out = jax.block_until_ready(out)

    ref = height_block_ref(x, params, num_heads)
    assert out.shape == (B, S, D) and out.dtype == jnp.float32
    # Tolerance covers bf16-operand MXU matmuls (f32 accumulate), tanh-GELU
    # and approx reciprocal drift vs. the exact f32 reference.
    assert jnp.allclose(out, ref, rtol=2e-2, atol=3e-2), (
        f"max abs diff {jnp.max(jnp.abs(out - ref))}")

    print("KERNEL_OK")
</pallas_src>

<mosaic_0001>
module attributes {stable_mosaic.version = 11 : i64} {
  func.func @height_block_kernel(%arg0: memref<2x8x32xf32, #tpu.memory_space<vmem>>, %arg1: memref<1x32xf32, #tpu.memory_space<vmem>>, %arg2: memref<1x32xf32, #tpu.memory_space<vmem>>, %arg3: memref<32x96xbf16, #tpu.memory_space<vmem>>, %arg4: memref<1x96xf32, #tpu.memory_space<vmem>>, %arg5: memref<32x32xbf16, #tpu.memory_space<vmem>>, %arg6: memref<1x32xf32, #tpu.memory_space<vmem>>, %arg7: memref<32x32xbf16, #tpu.memory_space<vmem>>, %arg8: memref<1x32xf32, #tpu.memory_space<vmem>>, %arg9: memref<32x32xbf16, #tpu.memory_space<vmem>>, %arg10: memref<1x32xf32, #tpu.memory_space<vmem>>, %arg11: memref<1x32xf32, #tpu.memory_space<vmem>>, %arg12: memref<1x32xf32, #tpu.memory_space<vmem>>, %arg13: memref<32x128xbf16, #tpu.memory_space<vmem>>, %arg14: memref<1x128xf32, #tpu.memory_space<vmem>>, %arg15: memref<128x32xbf16, #tpu.memory_space<vmem>>, %arg16: memref<1x32xf32, #tpu.memory_space<vmem>>, %arg17: memref<2x8x32xf32, #tpu.memory_space<vmem>>) attributes {dimension_semantics = [], scalar_prefetch = 0 : i64, scratch_operands = 0 : i64, tpu.core_type = #tpu.core_type<tc>} {
    %c0 = arith.constant 0 : index
    %c0_0 = arith.constant 0 : index
    %c0_1 = arith.constant 0 : index
    %0 = vector.load %arg0[%c0, %c0_0, %c0_1] : memref<2x8x32xf32, #tpu.memory_space<vmem>>, vector<2x8x32xf32>
    %1 = vector.shape_cast %0 : vector<2x8x32xf32> to vector<16x32xf32>
    %c0_2 = arith.constant 0 : index
    %c0_3 = arith.constant 0 : index
    %2 = vector.load %arg1[%c0_2, %c0_3] : memref<1x32xf32, #tpu.memory_space<vmem>>, vector<1x32xf32>
    %c0_4 = arith.constant 0 : index
    %c0_5 = arith.constant 0 : index
    %3 = vector.load %arg2[%c0_4, %c0_5] : memref<1x32xf32, #tpu.memory_space<vmem>>, vector<1x32xf32>
    %cst = arith.constant dense<0.000000e+00> : vector<16xf32>
    %4 = vector.multi_reduction <add>, %1, %cst [1] : vector<16x32xf32> to vector<16xf32>
    %5 = vector.shape_cast %4 : vector<16xf32> to vector<16x1xf32>
    %cst_6 = arith.constant 3.200000e+01 : f32
    %6 = vector.broadcast %cst_6 : f32 to vector<16x1xf32>
    %7 = arith.divf %5, %6 : vector<16x1xf32>
    %8 = vector.broadcast %7 : vector<16x1xf32> to vector<16x32xf32>
    %9 = arith.subf %1, %8 : vector<16x32xf32>
    %10 = arith.mulf %9, %9 : vector<16x32xf32>
    %cst_7 = arith.constant dense<0.000000e+00> : vector<16xf32>
    %11 = vector.multi_reduction <add>, %10, %cst_7 [1] : vector<16x32xf32> to vector<16xf32>
    %12 = vector.shape_cast %11 : vector<16xf32> to vector<16x1xf32>
    %cst_8 = arith.constant 3.200000e+01 : f32
    %13 = vector.broadcast %cst_8 : f32 to vector<16x1xf32>
    %14 = arith.divf %12, %13 : vector<16x1xf32>
    %cst_9 = arith.constant 9.99999997E-7 : f32
    %15 = vector.broadcast %cst_9 : f32 to vector<16x1xf32>
    %16 = arith.addf %14, %15 : vector<16x1xf32>
    %17 = math.rsqrt %16 : vector<16x1xf32>
    %18 = vector.broadcast %17 : vector<16x1xf32> to vector<16x32xf32>
    %19 = arith.mulf %9, %18 : vector<16x32xf32>
    %20 = vector.broadcast %2 : vector<1x32xf32> to vector<16x32xf32>
    %21 = arith.mulf %19, %20 : vector<16x32xf32>
    %22 = vector.broadcast %3 : vector<1x32xf32> to vector<16x32xf32>
    %23 = arith.addf %21, %22 : vector<16x32xf32>
    %24 = arith.truncf %23 : vector<16x32xf32> to vector<16x32xbf16>
    %c0_10 = arith.constant 0 : index
    %c0_11 = arith.constant 0 : index
    %25 = vector.load %arg3[%c0_10, %c0_11] : memref<32x96xbf16, #tpu.memory_space<vmem>>, vector<32x96xbf16>
    %cst_12 = arith.constant dense<0.000000e+00> : vector<16x96xf32>
    %26 = tpu.matmul %24, %25, %cst_12 {dimension_numbers = #tpu.dot_dimension_numbers<[1], [0], [0], [1], [0, 0, 1, 1], [], []>} : vector<16x32xbf16>, vector<32x96xbf16>, vector<16x96xf32> -> vector<16x96xf32>
    %c0_13 = arith.constant 0 : index
    %c0_14 = arith.constant 0 : index
    %27 = vector.load %arg4[%c0_13, %c0_14] : memref<1x96xf32, #tpu.memory_space<vmem>>, vector<1x96xf32>
    %28 = vector.broadcast %27 : vector<1x96xf32> to vector<16x96xf32>
    %29 = arith.addf %26, %28 : vector<16x96xf32>
    %30 = vector.extract_strided_slice %29 {offsets = [0, 0], sizes = [16, 32], strides = [1, 1]} : vector<16x96xf32> to vector<16x32xf32>
    %31 = vector.shape_cast %30 : vector<16x32xf32> to vector<2x8x32xf32>
    %32 = vector.extract_strided_slice %29 {offsets = [0, 32], sizes = [16, 32], strides = [1, 1]} : vector<16x96xf32> to vector<16x32xf32>
    %33 = vector.shape_cast %32 : vector<16x32xf32> to vector<2x8x32xf32>
    %34 = vector.extract_strided_slice %29 {offsets = [0, 64], sizes = [16, 32], strides = [1, 1]} : vector<16x96xf32> to vector<16x32xf32>
    %35 = vector.shape_cast %34 : vector<16x32xf32> to vector<2x8x32xf32>
    %36 = vector.extract_strided_slice %31 {offsets = [0, 0, 0], sizes = [2, 8, 8], strides = [1, 1, 1]} : vector<2x8x32xf32> to vector<2x8x8xf32>
    %37 = arith.truncf %36 : vector<2x8x8xf32> to vector<2x8x8xbf16>
    %38 = vector.extract_strided_slice %33 {offsets = [0, 0, 0], sizes = [2, 8, 8], strides = [1, 1, 1]} : vector<2x8x32xf32> to vector<2x8x8xf32>
    %39 = arith.truncf %38 : vector<2x8x8xf32> to vector<2x8x8xbf16>
    %40 = vector.extract_strided_slice %35 {offsets = [0, 0, 0], sizes = [2, 8, 8], strides = [1, 1, 1]} : vector<2x8x32xf32> to vector<2x8x8xf32>
    %41 = arith.truncf %40 : vector<2x8x8xf32> to vector<2x8x8xbf16>
    "tpu.trace_start"() <{level = 10 : i32, message = "bqd,bkd->bqk"}> : () -> ()
    %cst_15 = arith.constant dense<0.000000e+00> : vector<2x8x8xf32>
    %42 = tpu.matmul %37, %39, %cst_15 {dimension_numbers = #tpu.dot_dimension_numbers<[2], [2], [1], [1], [0, 0, 0, 1, 1, 1], [0], [0]>} : vector<2x8x8xbf16>, vector<2x8x8xbf16>, vector<2x8x8xf32> -> vector<2x8x8xf32>
    "tpu.trace_stop"() : () -> ()
    %cst_16 = arith.constant 0.353553385 : f32
    %43 = vector.broadcast %cst_16 : f32 to vector<2x8x8xf32>
    %44 = arith.mulf %42, %43 : vector<2x8x8xf32>
    %cst_17 = arith.constant dense<0xFF800000> : vector<2x8xf32>
    %45 = vector.multi_reduction <maximumf>, %44, %cst_17 [2] : vector<2x8x8xf32> to vector<2x8xf32>
    %46 = vector.shape_cast %45 : vector<2x8xf32> to vector<2x8x1xf32>
    %47 = vector.broadcast %46 : vector<2x8x1xf32> to vector<2x8x8xf32>
    %48 = arith.subf %44, %47 : vector<2x8x8xf32>
    %49 = math.exp %48 : vector<2x8x8xf32>
    %cst_18 = arith.constant dense<0.000000e+00> : vector<2x8xf32>
    %50 = vector.multi_reduction <add>, %49, %cst_18 [2] : vector<2x8x8xf32> to vector<2x8xf32>
    %51 = vector.shape_cast %50 : vector<2x8xf32> to vector<2x8x1xf32>
    %52 = tpu.reciprocal %51 {approx = true} : vector<2x8x1xf32> -> vector<2x8x1xf32>
    %53 = vector.broadcast %52 : vector<2x8x1xf32> to vector<2x8x8xf32>
    %54 = arith.mulf %49, %53 : vector<2x8x8xf32>
    %55 = arith.truncf %54 : vector<2x8x8xf32> to vector<2x8x8xbf16>
    "tpu.trace_start"() <{level = 10 : i32, message = "bqk,bkd->bqd"}> : () -> ()
    %cst_19 = arith.constant dense<0.000000e+00> : vector<2x8x8xf32>
    %56 = tpu.matmul %55, %41, %cst_19 {dimension_numbers = #tpu.dot_dimension_numbers<[2], [1], [1], [2], [0, 0, 0, 1, 1, 2], [0], [0]>} : vector<2x8x8xbf16>, vector<2x8x8xbf16>, vector<2x8x8xf32> -> vector<2x8x8xf32>
    "tpu.trace_stop"() : () -> ()
    %57 = vector.extract_strided_slice %31 {offsets = [0, 0, 8], sizes = [2, 8, 8], strides = [1, 1, 1]} : vector<2x8x32xf32> to vector<2x8x8xf32>
    %58 = arith.truncf %57 : vector<2x8x8xf32> to vector<2x8x8xbf16>
    %59 = vector.extract_strided_slice %33 {offsets = [0, 0, 8], sizes = [2, 8, 8], strides = [1, 1, 1]} : vector<2x8x32xf32> to vector<2x8x8xf32>
    %60 = arith.truncf %59 : vector<2x8x8xf32> to vector<2x8x8xbf16>
    %61 = vector.extract_strided_slice %35 {offsets = [0, 0, 8], sizes = [2, 8, 8], strides = [1, 1, 1]} : vector<2x8x32xf32> to vector<2x8x8xf32>
    %62 = arith.truncf %61 : vector<2x8x8xf32> to vector<2x8x8xbf16>
    "tpu.trace_start"() <{level = 10 : i32, message = "bqd,bkd->bqk"}> : () -> ()
    %cst_20 = arith.constant dense<0.000000e+00> : vector<2x8x8xf32>
    %63 = tpu.matmul %58, %60, %cst_20 {dimension_numbers = #tpu.dot_dimension_numbers<[2], [2], [1], [1], [0, 0, 0, 1, 1, 1], [0], [0]>} : vector<2x8x8xbf16>, vector<2x8x8xbf16>, vector<2x8x8xf32> -> vector<2x8x8xf32>
    "tpu.trace_stop"() : () -> ()
    %cst_21 = arith.constant 0.353553385 : f32
    %64 = vector.broadcast %cst_21 : f32 to vector<2x8x8xf32>
    %65 = arith.mulf %63, %64 : vector<2x8x8xf32>
    %cst_22 = arith.constant dense<0xFF800000> : vector<2x8xf32>
    %66 = vector.multi_reduction <maximumf>, %65, %cst_22 [2] : vector<2x8x8xf32> to vector<2x8xf32>
    %67 = vector.shape_cast %66 : vector<2x8xf32> to vector<2x8x1xf32>
    %68 = vector.broadcast %67 : vector<2x8x1xf32> to vector<2x8x8xf32>
    %69 = arith.subf %65, %68 : vector<2x8x8xf32>
    %70 = math.exp %69 : vector<2x8x8xf32>
    %cst_23 = arith.constant dense<0.000000e+00> : vector<2x8xf32>
    %71 = vector.multi_reduction <add>, %70, %cst_23 [2] : vector<2x8x8xf32> to vector<2x8xf32>
    %72 = vector.shape_cast %71 : vector<2x8xf32> to vector<2x8x1xf32>
    %73 = tpu.reciprocal %72 {approx = true} : vector<2x8x1xf32> -> vector<2x8x1xf32>
    %74 = vector.broadcast %73 : vector<2x8x1xf32> to vector<2x8x8xf32>
    %75 = arith.mulf %70, %74 : vector<2x8x8xf32>
    %76 = arith.truncf %75 : vector<2x8x8xf32> to vector<2x8x8xbf16>
    "tpu.trace_start"() <{level = 10 : i32, message = "bqk,bkd->bqd"}> : () -> ()
    %cst_24 = arith.constant dense<0.000000e+00> : vector<2x8x8xf32>
    %77 = tpu.matmul %76, %62, %cst_24 {dimension_numbers = #tpu.dot_dimension_numbers<[2], [1], [1], [2], [0, 0, 0, 1, 1, 2], [0], [0]>} : vector<2x8x8xbf16>, vector<2x8x8xbf16>, vector<2x8x8xf32> -> vector<2x8x8xf32>
    "tpu.trace_stop"() : () -> ()
    %78 = vector.extract_strided_slice %31 {offsets = [0, 0, 16], sizes = [2, 8, 8], strides = [1, 1, 1]} : vector<2x8x32xf32> to vector<2x8x8xf32>
    %79 = arith.truncf %78 : vector<2x8x8xf32> to vector<2x8x8xbf16>
    %80 = vector.extract_strided_slice %33 {offsets = [0, 0, 16], sizes = [2, 8, 8], strides = [1, 1, 1]} : vector<2x8x32xf32> to vector<2x8x8xf32>
    %81 = arith.truncf %80 : vector<2x8x8xf32> to vector<2x8x8xbf16>
    %82 = vector.extract_strided_slice %35 {offsets = [0, 0, 16], sizes = [2, 8, 8], strides = [1, 1, 1]} : vector<2x8x32xf32> to vector<2x8x8xf32>
    %83 = arith.truncf %82 : vector<2x8x8xf32> to vector<2x8x8xbf16>
    "tpu.trace_start"() <{level = 10 : i32, message = "bqd,bkd->bqk"}> : () -> ()
    %cst_25 = arith.constant dense<0.000000e+00> : vector<2x8x8xf32>
    %84 = tpu.matmul %79, %81, %cst_25 {dimension_numbers = #tpu.dot_dimension_numbers<[2], [2], [1], [1], [0, 0, 0, 1, 1, 1], [0], [0]>} : vector<2x8x8xbf16>, vector<2x8x8xbf16>, vector<2x8x8xf32> -> vector<2x8x8xf32>
    "tpu.trace_stop"() : () -> ()
    %cst_26 = arith.constant 0.353553385 : f32
    %85 = vector.broadcast %cst_26 : f32 to vector<2x8x8xf32>
    %86 = arith.mulf %84, %85 : vector<2x8x8xf32>
    %cst_27 = arith.constant dense<0xFF800000> : vector<2x8xf32>
    %87 = vector.multi_reduction <maximumf>, %86, %cst_27 [2] : vector<2x8x8xf32> to vector<2x8xf32>
    %88 = vector.shape_cast %87 : vector<2x8xf32> to vector<2x8x1xf32>
    %89 = vector.broadcast %88 : vector<2x8x1xf32> to vector<2x8x8xf32>
    %90 = arith.subf %86, %89 : vector<2x8x8xf32>
    %91 = math.exp %90 : vector<2x8x8xf32>
    %cst_28 = arith.constant dense<0.000000e+00> : vector<2x8xf32>
    %92 = vector.multi_reduction <add>, %91, %cst_28 [2] : vector<2x8x8xf32> to vector<2x8xf32>
    %93 = vector.shape_cast %92 : vector<2x8xf32> to vector<2x8x1xf32>
    %94 = tpu.reciprocal %93 {approx = true} : vector<2x8x1xf32> -> vector<2x8x1xf32>
    %95 = vector.broadcast %94 : vector<2x8x1xf32> to vector<2x8x8xf32>
    %96 = arith.mulf %91, %95 : vector<2x8x8xf32>
    %97 = arith.truncf %96 : vector<2x8x8xf32> to vector<2x8x8xbf16>
    "tpu.trace_start"() <{level = 10 : i32, message = "bqk,bkd->bqd"}> : () -> ()
    %cst_29 = arith.constant dense<0.000000e+00> : vector<2x8x8xf32>
    %98 = tpu.matmul %97, %83, %cst_29 {dimension_numbers = #tpu.dot_dimension_numbers<[2], [1], [1], [2], [0, 0, 0, 1, 1, 2], [0], [0]>} : vector<2x8x8xbf16>, vector<2x8x8xbf16>, vector<2x8x8xf32> -> vector<2x8x8xf32>
    "tpu.trace_stop"() : () -> ()
    %99 = vector.extract_strided_slice %31 {offsets = [0, 0, 24], sizes = [2, 8, 8], strides = [1, 1, 1]} : vector<2x8x32xf32> to vector<2x8x8xf32>
    %100 = arith.truncf %99 : vector<2x8x8xf32> to vector<2x8x8xbf16>
    %101 = vector.extract_strided_slice %33 {offsets = [0, 0, 24], sizes = [2, 8, 8], strides = [1, 1, 1]} : vector<2x8x32xf32> to vector<2x8x8xf32>
    %102 = arith.truncf %101 : vector<2x8x8xf32> to vector<2x8x8xbf16>
    %103 = vector.extract_strided_slice %35 {offsets = [0, 0, 24], sizes = [2, 8, 8], strides = [1, 1, 1]} : vector<2x8x32xf32> to vector<2x8x8xf32>
    %104 = arith.truncf %103 : vector<2x8x8xf32> to vector<2x8x8xbf16>
    "tpu.trace_start"() <{level = 10 : i32, message = "bqd,bkd->bqk"}> : () -> ()
    %cst_30 = arith.constant dense<0.000000e+00> : vector<2x8x8xf32>
    %105 = tpu.matmul %100, %102, %cst_30 {dimension_numbers = #tpu.dot_dimension_numbers<[2], [2], [1], [1], [0, 0, 0, 1, 1, 1], [0], [0]>} : vector<2x8x8xbf16>, vector<2x8x8xbf16>, vector<2x8x8xf32> -> vector<2x8x8xf32>
    "tpu.trace_stop"() : () -> ()
    %cst_31 = arith.constant 0.353553385 : f32
    %106 = vector.broadcast %cst_31 : f32 to vector<2x8x8xf32>
    %107 = arith.mulf %105, %106 : vector<2x8x8xf32>
    %cst_32 = arith.constant dense<0xFF800000> : vector<2x8xf32>
    %108 = vector.multi_reduction <maximumf>, %107, %cst_32 [2] : vector<2x8x8xf32> to vector<2x8xf32>
    %109 = vector.shape_cast %108 : vector<2x8xf32> to vector<2x8x1xf32>
    %110 = vector.broadcast %109 : vector<2x8x1xf32> to vector<2x8x8xf32>
    %111 = arith.subf %107, %110 : vector<2x8x8xf32>
    %112 = math.exp %111 : vector<2x8x8xf32>
    %cst_33 = arith.constant dense<0.000000e+00> : vector<2x8xf32>
    %113 = vector.multi_reduction <add>, %112, %cst_33 [2] : vector<2x8x8xf32> to vector<2x8xf32>
    %114 = vector.shape_cast %113 : vector<2x8xf32> to vector<2x8x1xf32>
    %115 = tpu.reciprocal %114 {approx = true} : vector<2x8x1xf32> -> vector<2x8x1xf32>
    %116 = vector.broadcast %115 : vector<2x8x1xf32> to vector<2x8x8xf32>
    %117 = arith.mulf %112, %116 : vector<2x8x8xf32>
    %118 = arith.truncf %117 : vector<2x8x8xf32> to vector<2x8x8xbf16>
    "tpu.trace_start"() <{level = 10 : i32, message = "bqk,bkd->bqd"}> : () -> ()
    %cst_34 = arith.constant dense<0.000000e+00> : vector<2x8x8xf32>
    %119 = tpu.matmul %118, %104, %cst_34 {dimension_numbers = #tpu.dot_dimension_numbers<[2], [1], [1], [2], [0, 0, 0, 1, 1, 2], [0], [0]>} : vector<2x8x8xbf16>, vector<2x8x8xbf16>, vector<2x8x8xf32> -> vector<2x8x8xf32>
    "tpu.trace_stop"() : () -> ()
    %120 = tpu.concatenate %56, %77, %98, %119 in 2 : vector<2x8x8xf32>, vector<2x8x8xf32>, vector<2x8x8xf32>, vector<2x8x8xf32> -> vector<2x8x32xf32>
    %121 = vector.shape_cast %120 : vector<2x8x32xf32> to vector<16x32xf32>
    %122 = arith.truncf %121 : vector<16x32xf32> to vector<16x32xbf16>
    %c0_35 = arith.constant 0 : index
    %c0_36 = arith.constant 0 : index
    %123 = vector.load %arg5[%c0_35, %c0_36] : memref<32x32xbf16, #tpu.memory_space<vmem>>, vector<32x32xbf16>
    %cst_37 = arith.constant dense<0.000000e+00> : vector<16x32xf32>
    %124 = tpu.matmul %122, %123, %cst_37 {dimension_numbers = #tpu.dot_dimension_numbers<[1], [0], [0], [1], [0, 0, 1, 1], [], []>} : vector<16x32xbf16>, vector<32x32xbf16>, vector<16x32xf32> -> vector<16x32xf32>
    %c0_38 = arith.constant 0 : index
    %c0_39 = arith.constant 0 : index
    %125 = vector.load %arg6[%c0_38, %c0_39] : memref<1x32xf32, #tpu.memory_space<vmem>>, vector<1x32xf32>
    %126 = vector.broadcast %125 : vector<1x32xf32> to vector<16x32xf32>
    %127 = arith.addf %124, %126 : vector<16x32xf32>
    %128 = arith.addf %1, %127 : vector<16x32xf32>
    %129 = arith.truncf %128 : vector<16x32xf32> to vector<16x32xbf16>
    %c0_40 = arith.constant 0 : index
    %c0_41 = arith.constant 0 : index
    %130 = vector.load %arg7[%c0_40, %c0_41] : memref<32x32xbf16, #tpu.memory_space<vmem>>, vector<32x32xbf16>
    %cst_42 = arith.constant dense<0.000000e+00> : vector<16x32xf32>
    %131 = tpu.matmul %129, %130, %cst_42 {dimension_numbers = #tpu.dot_dimension_numbers<[1], [0], [0], [1], [0, 0, 1, 1], [], []>} : vector<16x32xbf16>, vector<32x32xbf16>, vector<16x32xf32> -> vector<16x32xf32>
    %c0_43 = arith.constant 0 : index
    %c0_44 = arith.constant 0 : index
    %132 = vector.load %arg8[%c0_43, %c0_44] : memref<1x32xf32, #tpu.memory_space<vmem>>, vector<1x32xf32>
    %133 = vector.broadcast %132 : vector<1x32xf32> to vector<16x32xf32>
    %134 = arith.addf %131, %133 : vector<16x32xf32>
    %cst_45 = arith.constant 5.000000e-01 : f32
    %135 = vector.broadcast %cst_45 : f32 to vector<16x32xf32>
    %136 = arith.mulf %135, %134 : vector<16x32xf32>
    %cst_46 = arith.constant 4.471500e-02 : f32
    %137 = vector.broadcast %cst_46 : f32 to vector<16x32xf32>
    %138 = arith.mulf %137, %134 : vector<16x32xf32>
    %139 = arith.mulf %138, %134 : vector<16x32xf32>
    %140 = arith.mulf %139, %134 : vector<16x32xf32>
    %141 = arith.addf %134, %140 : vector<16x32xf32>
    %cst_47 = arith.constant 0.797884583 : f32
    %142 = vector.broadcast %cst_47 : f32 to vector<16x32xf32>
    %143 = arith.mulf %142, %141 : vector<16x32xf32>
    %144 = math.tanh %143 : vector<16x32xf32>
    %cst_48 = arith.constant 1.000000e+00 : f32
    %145 = vector.broadcast %cst_48 : f32 to vector<16x32xf32>
    %146 = arith.addf %145, %144 : vector<16x32xf32>
    %147 = arith.mulf %136, %146 : vector<16x32xf32>
    %148 = arith.truncf %147 : vector<16x32xf32> to vector<16x32xbf16>
    %c0_49 = arith.constant 0 : index
    %c0_50 = arith.constant 0 : index
    %149 = vector.load %arg9[%c0_49, %c0_50] : memref<32x32xbf16, #tpu.memory_space<vmem>>, vector<32x32xbf16>
    %cst_51 = arith.constant dense<0.000000e+00> : vector<16x32xf32>
    %150 = tpu.matmul %148, %149, %cst_51 {dimension_numbers = #tpu.dot_dimension_numbers<[1], [0], [0], [1], [0, 0, 1, 1], [], []>} : vector<16x32xbf16>, vector<32x32xbf16>, vector<16x32xf32> -> vector<16x32xf32>
    %c0_52 = arith.constant 0 : index
    %c0_53 = arith.constant 0 : index
    %151 = vector.load %arg10[%c0_52, %c0_53] : memref<1x32xf32, #tpu.memory_space<vmem>>, vector<1x32xf32>
    %152 = vector.broadcast %151 : vector<1x32xf32> to vector<16x32xf32>
    %153 = arith.addf %150, %152 : vector<16x32xf32>
    %154 = arith.addf %128, %153 : vector<16x32xf32>
    %c0_54 = arith.constant 0 : index
    %c0_55 = arith.constant 0 : index
    %155 = vector.load %arg11[%c0_54, %c0_55] : memref<1x32xf32, #tpu.memory_space<vmem>>, vector<1x32xf32>
    %c0_56 = arith.constant 0 : index
    %c0_57 = arith.constant 0 : index
    %156 = vector.load %arg12[%c0_56, %c0_57] : memref<1x32xf32, #tpu.memory_space<vmem>>, vector<1x32xf32>
    %cst_58 = arith.constant dense<0.000000e+00> : vector<16xf32>
    %157 = vector.multi_reduction <add>, %154, %cst_58 [1] : vector<16x32xf32> to vector<16xf32>
    %158 = vector.shape_cast %157 : vector<16xf32> to vector<16x1xf32>
    %cst_59 = arith.constant 3.200000e+01 : f32
    %159 = vector.broadcast %cst_59 : f32 to vector<16x1xf32>
    %160 = arith.divf %158, %159 : vector<16x1xf32>
    %161 = vector.broadcast %160 : vector<16x1xf32> to vector<16x32xf32>
    %162 = arith.subf %154, %161 : vector<16x32xf32>
    %163 = arith.mulf %162, %162 : vector<16x32xf32>
    %cst_60 = arith.constant dense<0.000000e+00> : vector<16xf32>
    %164 = vector.multi_reduction <add>, %163, %cst_60 [1] : vector<16x32xf32> to vector<16xf32>
    %165 = vector.shape_cast %164 : vector<16xf32> to vector<16x1xf32>
    %cst_61 = arith.constant 3.200000e+01 : f32
    %166 = vector.broadcast %cst_61 : f32 to vector<16x1xf32>
    %167 = arith.divf %165, %166 : vector<16x1xf32>
    %cst_62 = arith.constant 9.99999997E-7 : f32
    %168 = vector.broadcast %cst_62 : f32 to vector<16x1xf32>
    %169 = arith.addf %167, %168 : vector<16x1xf32>
    %170 = math.rsqrt %169 : vector<16x1xf32>
    %171 = vector.broadcast %170 : vector<16x1xf32> to vector<16x32xf32>
    %172 = arith.mulf %162, %171 : vector<16x32xf32>
    %173 = vector.broadcast %155 : vector<1x32xf32> to vector<16x32xf32>
    %174 = arith.mulf %172, %173 : vector<16x32xf32>
    %175 = vector.broadcast %156 : vector<1x32xf32> to vector<16x32xf32>
    %176 = arith.addf %174, %175 : vector<16x32xf32>
    %177 = arith.truncf %176 : vector<16x32xf32> to vector<16x32xbf16>
    %c0_63 = arith.constant 0 : index
    %c0_64 = arith.constant 0 : index
    %178 = vector.load %arg13[%c0_63, %c0_64] : memref<32x128xbf16, #tpu.memory_space<vmem>>, vector<32x128xbf16>
    %cst_65 = arith.constant dense<0.000000e+00> : vector<16x128xf32>
    %179 = tpu.matmul %177, %178, %cst_65 {dimension_numbers = #tpu.dot_dimension_numbers<[1], [0], [0], [1], [0, 0, 1, 1], [], []>} : vector<16x32xbf16>, vector<32x128xbf16>, vector<16x128xf32> -> vector<16x128xf32>
    %c0_66 = arith.constant 0 : index
    %c0_67 = arith.constant 0 : index
    %180 = vector.load %arg14[%c0_66, %c0_67] : memref<1x128xf32, #tpu.memory_space<vmem>>, vector<1x128xf32>
    %181 = vector.broadcast %180 : vector<1x128xf32> to vector<16x128xf32>
    %182 = arith.addf %179, %181 : vector<16x128xf32>
    %cst_68 = arith.constant 5.000000e-01 : f32
    %183 = vector.broadcast %cst_68 : f32 to vector<16x128xf32>
    %184 = arith.mulf %183, %182 : vector<16x128xf32>
    %cst_69 = arith.constant 4.471500e-02 : f32
    %185 = vector.broadcast %cst_69 : f32 to vector<16x128xf32>
    %186 = arith.mulf %185, %182 : vector<16x128xf32>
    %187 = arith.mulf %186, %182 : vector<16x128xf32>
    %188 = arith.mulf %187, %182 : vector<16x128xf32>
    %189 = arith.addf %182, %188 : vector<16x128xf32>
    %cst_70 = arith.constant 0.797884583 : f32
    %190 = vector.broadcast %cst_70 : f32 to vector<16x128xf32>
    %191 = arith.mulf %190, %189 : vector<16x128xf32>
    %192 = math.tanh %191 : vector<16x128xf32>
    %cst_71 = arith.constant 1.000000e+00 : f32
    %193 = vector.broadcast %cst_71 : f32 to vector<16x128xf32>
    %194 = arith.addf %193, %192 : vector<16x128xf32>
    %195 = arith.mulf %184, %194 : vector<16x128xf32>
    %196 = arith.truncf %195 : vector<16x128xf32> to vector<16x128xbf16>
    %c0_72 = arith.constant 0 : index
    %c0_73 = arith.constant 0 : index
    %197 = vector.load %arg15[%c0_72, %c0_73] : memref<128x32xbf16, #tpu.memory_space<vmem>>, vector<128x32xbf16>
    %cst_74 = arith.constant dense<0.000000e+00> : vector<16x32xf32>
    %198 = tpu.matmul %196, %197, %cst_74 {dimension_numbers = #tpu.dot_dimension_numbers<[1], [0], [0], [1], [0, 0, 1, 1], [], []>} : vector<16x128xbf16>, vector<128x32xbf16>, vector<16x32xf32> -> vector<16x32xf32>
    %c0_75 = arith.constant 0 : index
    %c0_76 = arith.constant 0 : index
    %199 = vector.load %arg16[%c0_75, %c0_76] : memref<1x32xf32, #tpu.memory_space<vmem>>, vector<1x32xf32>
    %200 = vector.broadcast %199 : vector<1x32xf32> to vector<16x32xf32>
    %201 = arith.addf %198, %200 : vector<16x32xf32>
    %202 = arith.addf %154, %201 : vector<16x32xf32>
    %203 = vector.shape_cast %202 : vector<16x32xf32> to vector<2x8x32xf32>
    %c0_77 = arith.constant 0 : index
    %c0_78 = arith.constant 0 : index
    %c0_79 = arith.constant 0 : index
    %204 = vector.load %arg17[%c0_77, %c0_78, %c0_79] : memref<2x8x32xf32, #tpu.memory_space<vmem>>, vector<2x8x32xf32>
    tpu.vector_store %arg17[%c0_77, %c0_78, %c0_79], %203 {strides = array<i32>} : memref<2x8x32xf32, #tpu.memory_space<vmem>>, vector<2x8x32xf32>,
    return
  }
}

</mosaic_0001>

<bundles_post_ra>
// kernel: tpu_custom_call.1
= control target key start
LH: loop header
LB: loop body
LE: loop exit
PB: predicated region body
PF: predicated region fallthrough
CT: control target
= control target key end

     0   :  { %s2418_s0 = inlined_call_operand.vmem [shape: f32[2,8,32], index: 0, kind: input, shape index: {}]   ;;  %s2419_s1 = inlined_call_operand.vmem [shape: f32[1,32], index: 1, kind: input, shape index: {}]   ;;  %s2420_s2 = inlined_call_operand.vmem [shape: f32[1,32], index: 2, kind: input, shape index: {}]   ;;  %s2421_s3 = inlined_call_operand.vmem [shape: bf16[32,96], index: 3, kind: input, shape index: {}]   ;;  %s2422_s4 = inlined_call_operand.vmem [shape: f32[1,96], index: 4, kind: input, shape index: {}]   ;;  %s2423_s5 = inlined_call_operand.vmem [shape: bf16[32,32], index: 5, kind: input, shape index: {}]   ;;  %s2424_s6 = inlined_call_operand.vmem [shape: f32[1,32], index: 6, kind: input, shape index: {}]   ;;  %s2425_s7 = inlined_call_operand.vmem [shape: bf16[32,32], index: 7, kind: input, shape index: {}]   ;;  %s2426_s8 = inlined_call_operand.vmem [shape: f32[1,32], index: 8, kind: input, shape index: {}]   ;;  %s2427_s9 = inlined_call_operand.vmem [shape: bf16[32,32], index: 9, kind: input, shape index: {}]   ;;  %s2428_s10 = inlined_call_operand.vmem [shape: f32[1,32], index: 10, kind: input, shape index: {}]   ;;  %s2429_s11 = inlined_call_operand.vmem [shape: f32[1,32], index: 11, kind: input, shape index: {}]   ;;  %s2430_s12 = inlined_call_operand.vmem [shape: f32[1,32], index: 12, kind: input, shape index: {}]   ;;  %s2431_s13 = inlined_call_operand.hbm [shape: bf16[32,128], index: 13, kind: input, shape index: {}]   ;;  %s2432_s14 = inlined_call_operand.vmem [shape: f32[1,128], index: 14, kind: input, shape index: {}]   ;;  %s2433_s15 = inlined_call_operand.vmem [shape: bf16[128,32], index: 15, kind: input, shape index: {}]   ;;  %s2434_s16 = inlined_call_operand.vmem [shape: f32[1,32], index: 16, kind: input, shape index: {}]   ;;  %s2435_s17 = inlined_call_operand.hbm [shape: f32[2,8,32], index: 17, kind: output, shape index: {}]  }
   0x1   :  { %2437 = sst [smem:[#allocation8_spill]] %s2418_s0 }
   0x2   :  { %2438 = sst [smem:[#allocation9_spill]] %s2419_s1 }
   0x3   :  { %22 = vsyncpa [#allocation3], 0 }
   0x4   :  { %23 = vsyncpa [#allocation4], 0  ;;  %s2006_s24 = smov [#allocation2]  }
   0x5   :  { %s55_s25 = sshll.u32 %s2006_s24, 4  ;;  %s56_s25 = int_to_ptr.vmem [resolvable:$true] %s55_s25 }
   0x6   :  { %s1970_s26 = scalar_lea.vmem %s56_s25, 256  ;;  %p1975_p1 = scmp.lt.s32.totalorder %s56_s25, %s56_s25 }
   0x7   :  { %p1971_p0 = scmp.ne.s32.totalorder %s56_s25, %s1970_s26  ;;  %p1976_p2 = scmp.lt.s32.totalorder %s1970_s26, %s1970_s26 }
   0x9   :  { %p1977_p3 = por %p1976_p2, %p1975_p1 }
   0xb   :  { %p1978_p4 = pnand %p1977_p3, %p1971_p0 }
   0xd   :  { %1981 = shalt.err (!%p1978_p4)
}
   0xe   :  { %s2007_s27 = smov 64   ;;  %s2008_s28 = smov 4  }
   0xf   :  { %61 = dma.hbm_to_vmem [thread:$0]  %s2431_s13, 256, %s56_s25, [#allocation3], %s2007_s27, %s2007_s27, %s2008_s28  }
  0x10   :  { %2002 = dma.done.wait [#allocation3], 256  }
  0x11   :  { %2003 = vsyncadd [#allocation3], 4294967040  ;;  %vm76_vm0 = vcmask 261120   ;;  %s2439_s19 = sld [smem:[#allocation8_spill]]  ;;  %v1896_v14 = vld [vmem:[%s2421_s3 + $0x8] sm:$0xff]   ;;  %v2009_v15 = vmov 0.0  }
  0x12   :  { %1705 = vmatprep.subr.bf16.mxu0 %v2009_v15  ;;  %vm2010_vm1 = vmmov 0   ;;  %v1897_v16 = vld [vmem:[%s2421_s3] sm:$0xff]   ;;  %1725 = vmatprep.subr.bf16.mxu1 %v2009_v15  ;;  %s2440_s25 = sld [smem:[#allocation9_spill]]  ;;  %vm193_vm2 = vcmask 64512   ;;  %vm320_vm3 = vcmask 1043456   ;;  %s2013_s30 = smov 120  }
  0x13   :  { %1709 = vmatprep.mubr.msk.bf16.mxu0 %vm2010_vm1, %v2009_v15  ;;  %1706 = vmatpush3.bf16.msra.mxu0 %v1896_v14  ;;  %v1601_v29 = vld [vmem:[%s2420_s2] ss:$0 sm:$0xff]  ;;  %s2011_s2 = smov 96   ;;  %s2015_s18 = smov 80   ;;  %vm1104_vm4 = vcmask 130048   ;;  %vm1107_vm5 = vcmask 195584  }
  0x14   :  { %1707 = vmatprep.subr.bf16.mxu0 %v2009_v15  ;;  %1727 = vmatprep.mubr.msk.bf16.mxu1 %vm2010_vm1, %v2009_v15  ;;  %v1602_v34 = vld [vmem:[%s2422_s4] ss:$0 sm:$0xff]  ;;  %s2012_s4 = smov 88   ;;  %s2017_s1 = smov 48  }
  0x15   :  { %s2018_s20 = smov 72   ;;  %s2019_s13 = smov 104  }
  0x16   :  { %s2020_s21 = smov 40   ;;  %s2021_s22 = smov 8  }
  0x17   :  { %v2124_v0 = vld [vmem:[%s2439_s19] sm:$0xff]  ;;  %v2129_v1 = vld [vmem:[%s2439_s19 + $0x8] sm:$0xff]  ;;  %1708 = vmatpush3.bf16.msra.mxu0 %v1897_v16  ;;  %s2016_s19 = smov 112   ;;  %s2022_s23 = smov 16  }
  0x18   :  { %v77_v2 = vsel %vm76_vm0, %v2124_v0, 0.0  ;;  %v80_v3 = vsel %vm76_vm0, %v2129_v1, 0.0  ;;  %1713 = vmatprep.subr.bf16.mxu0 %v2009_v15  ;;  %v1600_v25 = vld [vmem:[%s2440_s25] ss:$0 sm:$0xff]  ;;  %s2023_s28 = smov 24  }
  0x19   :  { %78 = vadd.xlane.f32.xlu0 %v77_v2 }
  0x1d   :  { %81 = vadd.xlane.f32.xlu0 %v80_v3 }
  0xa2   :  { %v79_v4 = vpop.xlane.xlu0 %78 }
  0xa3   :  { %v84_v5 = vmul.f32 0.03125, %v79_v4 }
  0xa5   :  { %v86_v6 = vsub.f32 %v2124_v0, %v84_v5 }
  0xa6   :  { %v82_v7 = vpop.xlane.xlu0 %81 }
  0xa7   :  { %v85_v8 = vmul.f32 0.03125, %v82_v7  ;;  %v88_v9 = vmul.f32 %v86_v6, %v86_v6 }
  0xa9   :  { %v87_v10 = vsub.f32 %v2129_v1, %v85_v8  ;;  %v90_v11 = vsel %vm76_vm0, %v88_v9, 0.0 }
  0xaa   :  { %91 = vadd.xlane.f32.xlu1 %v90_v11 }
  0xab   :  { %v89_v12 = vmul.f32 %v87_v10, %v87_v10 }
  0xad   :  { %v93_v13 = vsel %vm76_vm0, %v89_v12, 0.0 }
  0xae   :  { %94 = vadd.xlane.f32.xlu1 %v93_v13 }
 0x133   :  { %v92_v17 = vpop.xlane.xlu1 %91 }
 0x134   :  { %v96_v18 = vmul.f32 0.03125, %v92_v17 }
 0x136   :  { %v98_v19 = vadd.f32 1e-06, %v96_v18 }
 0x137   :  { %v95_v20 = vpop.xlane.xlu1 %94 }
 0x138   :  { %1914 = vrsqrt.f32 %v98_v19  ;;  %v97_v21 = vmul.f32 0.03125, %v95_v20 }
 0x13a   :  { %v99_v22 = vadd.f32 1e-06, %v97_v21 }
 0x13c   :  { %1916 = vrsqrt.f32 %v99_v22 }
 0x145   :  { %v1915_v23 = vpop.eup %1914 }
 0x146   :  { %v102_v24 = vmul.f32 %v1915_v23, %v86_v6 }
 0x148   :  { %v110_v28 = vmul.f32 %v1600_v25, %v102_v24 }
 0x149   :  { %v1917_v26 = vpop.eup %1916 }
 0x14a   :  { %v103_v27 = vmul.f32 %v1917_v26, %v87_v10  ;;  %v118_v31 = vadd.f32 %v1601_v29, %v110_v28 }
 0x14c   :  { %v111_v30 = vmul.f32 %v1600_v25, %v103_v27 }
 0x14e   :  { %v119_v32 = vadd.f32 %v1601_v29, %v111_v30 }
 0x150   :  { %v120_v33 = vpack.c.bf16 %v119_v32, %v118_v31 }
 0x152   :  { %1710 = vmatmul.mubr.msk.bf16.vlgmr.msra.gmra.mxu0 %vm76_vm0, %v120_v33 }
 0x153   :  { %1715 = vmatprep.mubr.msk.bf16.mxu0 %vm2010_vm1, %v2009_v15 }
 0x212   :  { %v181_v35 = vpop.f32.mrf.mxu0 }
 0x213   :  { %v182_v36 = vadd.f32 %v1602_v34, %v181_v35 }
 0x214   :  { %v1711_v37 = vpop.f32.mrf.mxu0 }
 0x215   :  { %v2165_v38 = vpack.c.bf16 %v182_v36, %v182_v36 }
 0x216   :  { %v184_v39 = vpop.f32.mrf.mxu0 }
 0x217   :  { %v185_v40 = vadd.f32 %v1602_v34, %v184_v39  ;;  %191 = vrot.lane.b32.xlu0 %v2165_v38, %s2011_s2 }
 0x218   :  { %v1712_v41 = vpop.f32.mrf.mxu0 }
 0x219   :  { %v2168_v42 = vpack.c.bf16 %v185_v40, %v185_v40 }
 0x21b   :  { %241 = vrot.lane.b32.xlu1 %v2168_v42, %s2011_s2 }
 0x289   :  { %v192_v43 = vpop.permute.xlu0 %191 }
 0x28a   :  { %v198_v44 = vsel %vm193_vm2, %v192_v43, 0 }
 0x28b   :  { %1714 = vmatpush3.bf16.xpose.msra.mxu0 %v198_v44 }
 0x28c   :  { %1719 = vmatprep.subr.bf16.mxu0 %v2009_v15 }
 0x28d   :  { %v242_v45 = vpop.permute.xlu1 %241 }
 0x28e   :  { %v247_v46 = vsel %vm193_vm2, %v242_v45, 0 }
 0x292   :  { %1716 = vmatmul.mubr.msk.bf16.vlgmr.msra.gmra.mxu0 %vm193_vm2, %v2165_v38 }
 0x293   :  { %1720 = vmatpush3.bf16.xpose.msra.mxu0 %v247_v46  ;;  %1721 = vmatprep.mubr.msk.bf16.mxu0 %vm2010_vm1, %v2009_v15 }
 0x294   :  { %1731 = vmatprep.subr.bf16.mxu0 %v2009_v15 }
 0x29a   :  { %1722 = vmatmul.mubr.msk.bf16.vlgmr.msra.gmra.mxu0 %vm193_vm2, %v2168_v42 }
 0x29b   :  { %1733 = vmatprep.mubr.msk.bf16.mxu0 %vm2010_vm1, %v2009_v15 }
 0x352   :  { %v234_v47 = vpop.f32.mrf.mxu0 }
 0x353   :  { %v289_v48 = vmul.f32 0.35355338, %v234_v47 }
 0x354   :  { %v1717_v49 = vpop.f32.mrf.mxu0 }
 0x355   :  { %v291_v50 = vsel %vm193_vm2, %v289_v48, -inf }
 0x356   :  { %292 = vmax.xlane.f32.xlu1 %v291_v50  ;;  %v237_v51 = vpop.f32.mrf.mxu0 }
 0x358   :  { %v1718_v52 = vpop.f32.mrf.mxu0 }
 0x35a   :  { %v283_v53 = vpop.f32.mrf.mxu0 }
 0x35b   :  { %v290_v54 = vmul.f32 0.35355338, %v283_v53 }
 0x35c   :  { %v1723_v55 = vpop.f32.mrf.mxu0 }
 0x35d   :  { %v294_v56 = vsel %vm193_vm2, %v290_v54, -inf }
 0x35e   :  { %295 = vmax.xlane.f32.xlu0 %v294_v56  ;;  %v286_v57 = vpop.f32.mrf.mxu0 }
 0x360   :  { %v1724_v58 = vpop.f32.mrf.mxu0 }
 0x367   :  { %364 = vrot.lane.b32.xlu1 %v2168_v42, %s2007_s27 }
 0x36b   :  { %414 = vrot.lane.b32.xlu1 %v2165_v38, %s2012_s4 }
 0x3df   :  { %v293_v59 = vpop.xlane.xlu1 %292 }
 0x3e0   :  { %v297_v60 = vsub.f32 %v289_v48, %v293_v59 }
 0x3e2   :  { %v299_v61 = vmul.f32 1.442695, %v297_v60 }
 0x3e3   :  { %v365_v62 = vpop.permute.xlu1 %364 }
 0x3e4   :  { %1918 = vpow2.f32 %v299_v61  ;;  %v370_v63 = vsel %vm320_vm3, %v365_v62, 0 }
 0x3e5   :  { %1732 = vmatpush3.bf16.msra.mxu0 %v370_v63 }
 0x3e6   :  { %1743 = vmatprep.subr.bf16.mxu0 %v2009_v15 }
 0x3e7   :  { %v296_v2 = vpop.xlane.xlu0 %295  ;;  %v415_v10 = vpop.permute.xlu1 %414 }
 0x3e8   :  { %v298_v3 = vsub.f32 %v290_v54, %v296_v2  ;;  %v420_v18 = vsel %vm193_vm2, %v415_v10, 0 }
 0x3ea   :  { %v301_v4 = vmul.f32 1.442695, %v298_v3 }
 0x3ec   :  { %1920 = vpow2.f32 %v301_v4 }
 0x3f1   :  { %v1919_v5 = vpop.eup %1918 }
 0x3f2   :  { %v303_v6 = vsel %vm193_vm2, %v1919_v5, 0.0 }
 0x3f3   :  { %304 = vadd.xlane.f32.xlu0 %v303_v6 }
 0x3f9   :  { %v1921_v7 = vpop.eup %1920 }
 0x3fa   :  { %v306_v8 = vsel %vm193_vm2, %v1921_v7, 0.0 }
 0x3fb   :  { %307 = vadd.xlane.f32.xlu1 %v306_v8 }
 0x409   :  { %315 = vrot.lane.b32.xlu0 %v2165_v38, %s2007_s27  ;;  %s2014_s27 = smov 56  }
 0x40c   :  { %464 = vrot.lane.b32.xlu1 %v2168_v42, %s2012_s4 }
 0x40d   :  { %412 = vrot.lane.b32.xlu0 %v2165_v38, %s2013_s30 }
 0x410   :  { %462 = vrot.lane.b32.xlu1 %v2168_v42, %s2013_s30 }
 0x47c   :  { %v305_v9 = vpop.xlane.xlu0 %304 }
 0x47d   :  { %1922 = vrcp.f32 %v305_v9 }
 0x480   :  { %v316_v11 = vpop.permute.xlu0 %315 }
 0x481   :  { %v322_v12 = vsel %vm320_vm3, %v316_v11, 0 }
 0x482   :  { %1726 = vmatpush3.bf16.msra.mxu1 %v322_v12 }
 0x483   :  { %1737 = vmatprep.subr.bf16.mxu1 %v2009_v15 }
 0x484   :  { %v308_v13 = vpop.xlane.xlu1 %307  ;;  %v413_v23 = vpop.permute.xlu0 %412 }
 0x485   :  { %1924 = vrcp.f32 %v308_v13 }
 0x488   :  { %v465_v21 = vpop.permute.xlu1 %464 }
 0x489   :  { %v470_v24 = vsel %vm193_vm2, %v465_v21, 0 }
 0x48a   :  { %v1923_v14 = vpop.eup %1922 }
 0x48b   :  { %v311_v16 = vmul.f32 %v1923_v14, %v1919_v5 }
 0x48c   :  { %v463_v25 = vpop.permute.xlu1 %462 }
 0x48d   :  { %v313_v17 = vpack.c.bf16 %v311_v16, %v311_v16 }
 0x48f   :  { %1728 = vmatmul.mubr.msk.bf16.vlgmr.msra.gmra.mxu1 %vm193_vm2, %v313_v17 }
 0x490   :  { %1738 = vmatpush3.bf16.xpose.msra.mxu1 %v420_v18  ;;  %1739 = vmatprep.mubr.msk.bf16.mxu1 %vm2010_vm1, %v2009_v15 }
 0x491   :  { %1749 = vmatprep.subr.bf16.mxu1 %v2009_v15 }
 0x492   :  { %v1925_v19 = vpop.eup %1924 }
 0x493   :  { %v312_v20 = vmul.f32 %v1925_v19, %v1921_v7 }
 0x495   :  { %v314_v22 = vpack.c.bf16 %v312_v20, %v312_v20 }
 0x497   :  { %1734 = vmatmul.mubr.msk.bf16.vlgmr.msra.gmra.mxu0 %vm193_vm2, %v314_v22  ;;  %1740 = vmatmul.mubr.msk.bf16.vlgmr.msra.gmra.mxu1 %vm193_vm2, %v413_v23 }
 0x498   :  { %1744 = vmatpush3.bf16.xpose.msra.mxu0 %v470_v24  ;;  %1745 = vmatprep.mubr.msk.bf16.mxu0 %vm2010_vm1, %v2009_v15 }
 0x499   :  { %1755 = vmatprep.subr.bf16.mxu0 %v2009_v15  ;;  %1751 = vmatprep.mubr.msk.bf16.mxu1 %vm2010_vm1, %v2009_v15 }
 0x49f   :  { %1746 = vmatmul.mubr.msk.bf16.vlgmr.msra.gmra.mxu0 %vm193_vm2, %v463_v25 }
 0x4a0   :  { %1757 = vmatprep.mubr.msk.bf16.mxu0 %vm2010_vm1, %v2009_v15 }
 0x54f   :  { %v2215_v26 = vpop.f32.mrf.mxu1 }
 0x551   :  { %v1729_v27 = vpop.f32.mrf.mxu1 }
 0x553   :  { %v361_v28 = vpop.f32.mrf.mxu1 }
 0x555   :  { %v1730_v29 = vpop.f32.mrf.mxu1 }
 0x557   :  { %v2217_v30 = vpop.f32.mrf.mxu0  ;;  %v456_v31 = vpop.f32.mrf.mxu1 }
 0x558   :  { %v512_v32 = vmul.f32 0.35355338, %v456_v31 }
 0x559   :  { %v1735_v33 = vpop.f32.mrf.mxu0  ;;  %v1741_v34 = vpop.f32.mrf.mxu1 }
 0x55a   :  { %v514_v35 = vsel %vm193_vm2, %v512_v32, -inf }
 0x55b   :  { %515 = vmax.xlane.f32.xlu0 %v514_v35  ;;  %v409_v36 = vpop.f32.mrf.mxu0  ;;  %v459_v37 = vpop.f32.mrf.mxu1 }
 0x55d   :  { %v1736_v39 = vpop.f32.mrf.mxu0  ;;  %v1742_v40 = vpop.f32.mrf.mxu1 }
 0x55f   :  { %v506_v41 = vpop.f32.mrf.mxu0 }
 0x560   :  { %v513_v43 = vmul.f32 0.35355338, %v506_v41 }
 0x561   :  { %v1747_v44 = vpop.f32.mrf.mxu0 }
 0x562   :  { %v517_v45 = vsel %vm193_vm2, %v513_v43, -inf }
 0x563   :  { %518 = vmax.xlane.f32.xlu1 %v517_v45  ;;  %v509_v46 = vpop.f32.mrf.mxu0 }
 0x565   :  { %v1748_v47 = vpop.f32.mrf.mxu0 }
 0x574   :  { %586 = vrot.lane.b32.xlu1 %v2168_v42, %s2014_s27 }
 0x578   :  { %636 = vrot.lane.b32.xlu1 %v2165_v38, %s2015_s18 }
 0x57c   :  { %686 = vrot.lane.b32.xlu1 %v2168_v42, %s2015_s18 }
 0x580   :  { %684 = vrot.lane.b32.xlu1 %v2168_v42, %s2016_s19 }
 0x5e4   :  { %v516_v48 = vpop.xlane.xlu0 %515 }
 0x5e5   :  { %v520_v49 = vsub.f32 %v512_v32, %v516_v48 }
 0x5e7   :  { %v522_v50 = vmul.f32 1.442695, %v520_v49 }
 0x5e9   :  { %1926 = vpow2.f32 %v522_v50 }
 0x5ec   :  { %v519_v51 = vpop.xlane.xlu1 %518 }
 0x5ed   :  { %v521_v52 = vsub.f32 %v513_v43, %v519_v51 }
 0x5ef   :  { %v524_v53 = vmul.f32 1.442695, %v521_v52 }
 0x5f0   :  { %v587_v54 = vpop.permute.xlu1 %586 }
 0x5f1   :  { %1928 = vpow2.f32 %v524_v53  ;;  %v592_v55 = vsel %vm320_vm3, %v587_v54, 0 }
 0x5f2   :  { %1756 = vmatpush3.bf16.msra.mxu0 %v592_v55 }
 0x5f3   :  { %1767 = vmatprep.subr.bf16.mxu0 %v2009_v15 }
 0x5f4   :  { %v637_v4 = vpop.permute.xlu1 %636 }
 0x5f5   :  { %v642_v6 = vsel %vm193_vm2, %v637_v4, 0 }
 0x5f6   :  { %v1927_v56 = vpop.eup %1926 }
 0x5f7   :  { %v526_v57 = vsel %vm193_vm2, %v1927_v56, 0.0 }
 0x5f8   :  { %527 = vadd.xlane.f32.xlu0 %v526_v57  ;;  %v687_v9 = vpop.permute.xlu1 %686 }
 0x5f9   :  { %v692_v12 = vsel %vm193_vm2, %v687_v9, 0 }
 0x5fc   :  { %v685_v13 = vpop.permute.xlu1 %684 }
 0x5fe   :  { %v1929_v58 = vpop.eup %1928 }
 0x5ff   :  { %v529_v59 = vsel %vm193_vm2, %v1929_v58, 0.0 }
 0x600   :  { %530 = vadd.xlane.f32.xlu0 %v529_v59 }
 0x616   :  { %538 = vrot.lane.b32.xlu0 %v2165_v38, %s2014_s27 }
 0x61a   :  { %634 = vrot.lane.b32.xlu0 %v2165_v38, %s2016_s19  ;;  %s2024_s19 = smov [#allocation5]  }
 0x681   :  { %v528_v60 = vpop.xlane.xlu0 %527 }
 0x682   :  { %1930 = vrcp.f32 %v528_v60 }
 0x689   :  { %v531_v61 = vpop.xlane.xlu0 %530 }
 0x68a   :  { %1932 = vrcp.f32 %v531_v61 }
 0x68d   :  { %v539_v62 = vpop.permute.xlu0 %538 }
 0x68e   :  { %v544_v63 = vsel %vm320_vm3, %v539_v62, 0 }
 0x68f   :  { %v1931_v2 = vpop.eup %1930  ;;  %1750 = vmatpush3.bf16.msra.mxu1 %v544_v63 }
 0x690   :  { %1761 = vmatprep.subr.bf16.mxu1 %v2009_v15  ;;  %v534_v3 = vmul.f32 %v1931_v2, %v1927_v56 }
 0x691   :  { %v635_v11 = vpop.permute.xlu0 %634 }
 0x692   :  { %v536_v5 = vpack.c.bf16 %v534_v3, %v534_v3 }
 0x694   :  { %1752 = vmatmul.mubr.msk.bf16.vlgmr.msra.gmra.mxu1 %vm193_vm2, %v536_v5 }
 0x695   :  { %1762 = vmatpush3.bf16.xpose.msra.mxu1 %v642_v6  ;;  %1763 = vmatprep.mubr.msk.bf16.mxu1 %vm2010_vm1, %v2009_v15 }
 0x696   :  { %1773 = vmatprep.subr.bf16.mxu1 %v2009_v15 }
 0x697   :  { %v1933_v7 = vpop.eup %1932 }
 0x698   :  { %v535_v8 = vmul.f32 %v1933_v7, %v1929_v58 }
 0x69a   :  { %v537_v10 = vpack.c.bf16 %v535_v8, %v535_v8 }
 0x69c   :  { %1758 = vmatmul.mubr.msk.bf16.vlgmr.msra.gmra.mxu0 %vm193_vm2, %v537_v10  ;;  %1764 = vmatmul.mubr.msk.bf16.vlgmr.msra.gmra.mxu1 %vm193_vm2, %v635_v11 }
 0x69d   :  { %1768 = vmatpush3.bf16.xpose.msra.mxu0 %v692_v12  ;;  %1769 = vmatprep.mubr.msk.bf16.mxu0 %vm2010_vm1, %v2009_v15 }
 0x69e   :  { %1779 = vmatprep.subr.bf16.mxu0 %v2009_v15  ;;  %1775 = vmatprep.mubr.msk.bf16.mxu1 %vm2010_vm1, %v2009_v15 }
 0x6a4   :  { %1770 = vmatmul.mubr.msk.bf16.vlgmr.msra.gmra.mxu0 %vm193_vm2, %v685_v13 }
 0x6a5   :  { %1781 = vmatprep.mubr.msk.bf16.mxu0 %vm2010_vm1, %v2009_v15 }
 0x754   :  { %v2249_v14 = vpop.f32.mrf.mxu1 }
 0x756   :  { %v1753_v16 = vpop.f32.mrf.mxu1 }
 0x758   :  { %v583_v17 = vpop.f32.mrf.mxu1 }
 0x75a   :  { %v1754_v18 = vpop.f32.mrf.mxu1 }
 0x75c   :  { %v2251_v19 = vpop.f32.mrf.mxu0  ;;  %v678_v20 = vpop.f32.mrf.mxu1 }
 0x75d   :  { %v1881_v21 = vpack.i.bf16 %v2251_v19, %v2249_v14  ;;  %v734_v22 = vmul.f32 0.35355338, %v678_v20 }
 0x75e   :  { %v1759_v23 = vpop.f32.mrf.mxu0  ;;  %v1765_v24 = vpop.f32.mrf.mxu1 }
 0x75f   :  { %v736_v25 = vsel %vm193_vm2, %v734_v22, -inf }
 0x760   :  { %737 = vmax.xlane.f32.xlu0 %v736_v25  ;;  %v631_v27 = vpop.f32.mrf.mxu0  ;;  %v681_v28 = vpop.f32.mrf.mxu1 }
 0x762   :  { %v1760_v29 = vpop.f32.mrf.mxu0  ;;  %v1766_v31 = vpop.f32.mrf.mxu1 }
 0x764   :  { %v728_v32 = vpop.f32.mrf.mxu0 }
 0x765   :  { %v735_v33 = vmul.f32 0.35355338, %v728_v32 }
 0x766   :  { %v1771_v34 = vpop.f32.mrf.mxu0 }
 0x767   :  { %v739_v35 = vsel %vm193_vm2, %v735_v33, -inf }
 0x768   :  { %740 = vmax.xlane.f32.xlu1 %v739_v35  ;;  %v731_v36 = vpop.f32.mrf.mxu0 }
 0x76a   :  { %v1772_v37 = vpop.f32.mrf.mxu0 }
 0x779   :  { %808 = vrot.lane.b32.xlu1 %v2168_v42, %s2017_s1 }
 0x77d   :  { %858 = vrot.lane.b32.xlu1 %v2165_v38, %s2018_s20 }
 0x781   :  { %908 = vrot.lane.b32.xlu1 %v2168_v42, %s2018_s20 }
 0x785   :  { %906 = vrot.lane.b32.xlu1 %v2168_v42, %s2019_s13 }
 0x7e9   :  { %v738_v39 = vpop.xlane.xlu0 %737 }
 0x7ea   :  { %v742_v40 = vsub.f32 %v734_v22, %v738_v39 }
 0x7ec   :  { %v744_v41 = vmul.f32 1.442695, %v742_v40 }
 0x7ee   :  { %1934 = vpow2.f32 %v744_v41 }
 0x7f1   :  { %v741_v43 = vpop.xlane.xlu1 %740 }
 0x7f2   :  { %v743_v44 = vsub.f32 %v735_v33, %v741_v43 }
 0x7f4   :  { %v746_v45 = vmul.f32 1.442695, %v743_v44 }
 0x7f5   :  { %v809_v46 = vpop.permute.xlu1 %808 }
 0x7f6   :  { %1936 = vpow2.f32 %v746_v45  ;;  %v814_v47 = vsel %vm320_vm3, %v809_v46, 0 }
 0x7f7   :  { %1780 = vmatpush3.bf16.msra.mxu0 %v814_v47 }
 0x7f8   :  { %1791 = vmatprep.subr.bf16.mxu0 %v2009_v15 }
 0x7f9   :  { %v859_v58 = vpop.permute.xlu1 %858 }
 0x7fa   :  { %v864_v60 = vsel %vm193_vm2, %v859_v58, 0 }
 0x7fb   :  { %v1935_v48 = vpop.eup %1934 }
 0x7fc   :  { %v748_v49 = vsel %vm193_vm2, %v1935_v48, 0.0 }
 0x7fd   :  { %749 = vadd.xlane.f32.xlu0 %v748_v49  ;;  %v909_v63 = vpop.permute.xlu1 %908 }
 0x7fe   :  { %v914_v4 = vsel %vm193_vm2, %v909_v63, 0 }
 0x801   :  { %v907_v5 = vpop.permute.xlu1 %906 }
 0x803   :  { %v1937_v50 = vpop.eup %1936 }
 0x804   :  { %v751_v51 = vsel %vm193_vm2, %v1937_v50, 0.0 }
 0x805   :  { %752 = vadd.xlane.f32.xlu0 %v751_v51 }
 0x81b   :  { %760 = vrot.lane.b32.xlu0 %v2165_v38, %s2017_s1  ;;  %s1588_s1 = sshll.u32 %s2024_s19, 4  ;;  %s1589_s1 = int_to_ptr.vmem [resolvable:$true] %s1588_s1 }
 0x81c   :  { %p1987_p6 = scmp.lt.s32.totalorder %s1589_s1, %s1589_s1 }
 0x81f   :  { %856 = vrot.lane.b32.xlu0 %v2165_v38, %s2019_s13 }
 0x886   :  { %v750_v52 = vpop.xlane.xlu0 %749 }
 0x887   :  { %1938 = vrcp.f32 %v750_v52  ;;  %v1898_v52 = vld [vmem:[%s2423_s5 + $0x8] sm:$0xff]  }
 0x88e   :  { %v753_v53 = vpop.xlane.xlu0 %752 }
 0x88f   :  { %1940 = vrcp.f32 %v753_v53  ;;  %v1899_v53 = vld [vmem:[%s2423_s5] sm:$0xff]  }
 0x892   :  { %v761_v54 = vpop.permute.xlu0 %760 }
 0x893   :  { %v766_v55 = vsel %vm320_vm3, %v761_v54, 0 }
 0x894   :  { %v1939_v56 = vpop.eup %1938  ;;  %1774 = vmatpush3.bf16.msra.mxu1 %v766_v55 }
 0x895   :  { %1785 = vmatprep.subr.bf16.mxu1 %v2009_v15  ;;  %v756_v57 = vmul.f32 %v1939_v56, %v1935_v48 }
 0x896   :  { %v857_v3 = vpop.permute.xlu0 %856 }
 0x897   :  { %v758_v59 = vpack.c.bf16 %v756_v57, %v756_v57 }
 0x899   :  { %1776 = vmatmul.mubr.msk.bf16.vlgmr.msra.gmra.mxu1 %vm193_vm2, %v758_v59 }
 0x89a   :  { %1786 = vmatpush3.bf16.xpose.msra.mxu1 %v864_v60  ;;  %1787 = vmatprep.mubr.msk.bf16.mxu1 %vm2010_vm1, %v2009_v15 }
 0x89b   :  { %1797 = vmatprep.subr.bf16.mxu1 %v2009_v15 }
 0x89c   :  { %v1941_v61 = vpop.eup %1940 }
 0x89d   :  { %v757_v62 = vmul.f32 %v1941_v61, %v1937_v50 }
 0x89f   :  { %v759_v2 = vpack.c.bf16 %v757_v62, %v757_v62 }
 0x8a1   :  { %1782 = vmatmul.mubr.msk.bf16.vlgmr.msra.gmra.mxu0 %vm193_vm2, %v759_v2  ;;  %1788 = vmatmul.mubr.msk.bf16.vlgmr.msra.gmra.mxu1 %vm193_vm2, %v857_v3 }
 0x8a2   :  { %1792 = vmatpush3.bf16.xpose.msra.mxu0 %v914_v4  ;;  %1793 = vmatprep.mubr.msk.bf16.mxu0 %vm2010_vm1, %v2009_v15 }
 0x8a3   :  { %1803 = vmatprep.subr.bf16.mxu0 %v2009_v15  ;;  %1799 = vmatprep.mubr.msk.bf16.mxu1 %vm2010_vm1, %v2009_v15 }
 0x8a9   :  { %1794 = vmatmul.mubr.msk.bf16.vlgmr.msra.gmra.mxu0 %vm193_vm2, %v907_v5 }
 0x8aa   :  { %1805 = vmatprep.mubr.msk.bf16.mxu0 %vm2010_vm1, %v2009_v15 }
 0x959   :  { %v802_v6 = vpop.f32.mrf.mxu1 }
 0x95b   :  { %v1777_v7 = vpop.f32.mrf.mxu1 }
 0x95d   :  { %v805_v8 = vpop.f32.mrf.mxu1 }
 0x95f   :  { %v1778_v9 = vpop.f32.mrf.mxu1 }
 0x961   :  { %v850_v10 = vpop.f32.mrf.mxu0  ;;  %v900_v11 = vpop.f32.mrf.mxu1 }
 0x962   :  { %v956_v12 = vmul.f32 0.35355338, %v900_v11  ;;  %v1886_v32 = vpack.i.bf16 %v850_v10, %v802_v6 }
 0x963   :  { %v1783_v13 = vpop.f32.mrf.mxu0  ;;  %v1789_v16 = vpop.f32.mrf.mxu1 }
 0x964   :  { %v958_v17 = vsel %vm193_vm2, %v956_v12, -inf }
 0x965   :  { %959 = vmax.xlane.f32.xlu0 %v958_v17  ;;  %v853_v18 = vpop.f32.mrf.mxu0  ;;  %v903_v20 = vpop.f32.mrf.mxu1 }
 0x966   :  { %v1900_v20 = vld [vmem:[%s2425_s7 + $0x8] sm:$0xff]  }
 0x967   :  { %v1784_v22 = vpop.f32.mrf.mxu0  ;;  %v1790_v23 = vpop.f32.mrf.mxu1 }
 0x969   :  { %v950_v24 = vpop.f32.mrf.mxu0 }
 0x96a   :  { %v957_v25 = vmul.f32 0.35355338, %v950_v24 }
 0x96b   :  { %v1795_v27 = vpop.f32.mrf.mxu0 }
 0x96c   :  { %v961_v28 = vsel %vm193_vm2, %v957_v25, -inf }
 0x96d   :  { %962 = vmax.xlane.f32.xlu1 %v961_v28  ;;  %v953_v29 = vpop.f32.mrf.mxu0 }
 0x96f   :  { %v1796_v31 = vpop.f32.mrf.mxu0 }
 0x97e   :  { %1030 = vrot.lane.b32.xlu1 %v2168_v42, %s2020_s21 }
 0x982   :  { %1882 = vrot.lane.b32.xlu1 %v1881_v21, %s2021_s22 }
 0x986   :  { %1887 = vrot.lane.b32.xlu1 %v1886_v32, %s2022_s23 }
 0x9ee   :  { %v960_v33 = vpop.xlane.xlu0 %959 }
 0x9ef   :  { %v964_v34 = vsub.f32 %v956_v12, %v960_v33  ;;  %v1902_v33 = vld [vmem:[%s2427_s9 + $0x8] sm:$0xff]  }
 0x9f1   :  { %v966_v35 = vmul.f32 1.442695, %v964_v34  ;;  %v1903_v34 = vld [vmem:[%s2427_s9] sm:$0xff]  }
 0x9f3   :  { %1942 = vpow2.f32 %v966_v35 }
 0x9f6   :  { %v963_v36 = vpop.xlane.xlu1 %962 }
 0x9f7   :  { %v965_v37 = vsub.f32 %v957_v25, %v963_v36 }
 0x9f9   :  { %v968_v39 = vmul.f32 1.442695, %v965_v37 }
 0x9fa   :  { %v1031_v40 = vpop.permute.xlu1 %1030 }
 0x9fb   :  { %1944 = vpow2.f32 %v968_v39  ;;  %v1036_v42 = vsel %vm320_vm3, %v1031_v40, 0 }
 0x9fc   :  { %1804 = vmatpush3.bf16.msra.mxu0 %v1036_v42 }
 0x9fd   :  { %1817 = vmatprep.subr.bf16.mxu0 %v2009_v15 }
 0x9fe   :  { %v1883_v63 = vpop.permute.xlu1 %1882 }
 0x9ff   :  { %v1885_v3 = vunpack.i.h.bf16 %v1883_v63  ;;  %v1884_v4 = vunpack.i.l.bf16 %v1883_v63 }
 0xa00   :  { %v1943_v41 = vpop.eup %1942 }
 0xa01   :  { %v970_v14 = vsel %vm193_vm2, %v1943_v41, 0.0  ;;  %v1103_v8 = vsel %vm193_vm2, %v2217_v30, %v1885_v3  ;;  %v1102_v9 = vsel %vm193_vm2, %v2215_v26, %v1884_v4  ;;  %v1901_v26 = vld [vmem:[%s2425_s7] sm:$0xff]  }
 0xa02   :  { %971 = vadd.xlane.f32.xlu0 %v970_v14  ;;  %v1888_v2 = vpop.permute.xlu1 %1887  ;;  %v1622_v30 = vld [vmem:[%s2424_s6] ss:$0 sm:$0xff] }
 0xa03   :  { %v1890_v5 = vunpack.i.h.bf16 %v1888_v2  ;;  %v1889_v6 = vunpack.i.l.bf16 %v1888_v2 }
 0xa05   :  { %v1105_v12 = vsel %vm1104_vm4, %v1102_v9, %v1889_v6  ;;  %v1106_v13 = vsel %vm1104_vm4, %v1103_v8, %v1890_v5 }
 0xa08   :  { %v1945_v19 = vpop.eup %1944 }
 0xa09   :  { %v973_v21 = vsel %vm193_vm2, %v1945_v19, 0.0 }
 0xa0a   :  { %974 = vadd.xlane.f32.xlu0 %v973_v21 }
 0xa20   :  { %982 = vrot.lane.b32.xlu0 %v2165_v38, %s2020_s21 }
 0xa8b   :  { %v972_v43 = vpop.xlane.xlu0 %971 }
 0xa8c   :  { %1946 = vrcp.f32 %v972_v43 }
 0xa93   :  { %v975_v44 = vpop.xlane.xlu0 %974 }
 0xa94   :  { %1948 = vrcp.f32 %v975_v44 }
 0xa97   :  { %v983_v45 = vpop.permute.xlu0 %982 }
 0xa98   :  { %v988_v46 = vsel %vm320_vm3, %v983_v45, 0 }
 0xa99   :  { %v1947_v47 = vpop.eup %1946  ;;  %1798 = vmatpush3.bf16.msra.mxu1 %v988_v46 }
 0xa9a   :  { %v978_v48 = vmul.f32 %v1947_v47, %v1943_v41  ;;  %1809 = vmatprep.subr.bf16.mxu1 %v2009_v15 }
 0xa9c   :  { %v980_v49 = vpack.c.bf16 %v978_v48, %v978_v48 }
 0xa9e   :  { %1800 = vmatmul.mubr.msk.bf16.vlgmr.msra.gmra.mxu1 %vm193_vm2, %v980_v49 }
 0xa9f   :  { %1813 = vmatprep.mubr.msk.bf16.mxu1 %vm2010_vm1, %v2009_v15  ;;  %1810 = vmatpush3.bf16.msra.mxu1 %v1898_v52 }
 0xaa0   :  { %1811 = vmatprep.subr.bf16.mxu1 %v2009_v15 }
 0xaa1   :  { %v1949_v50 = vpop.eup %1948 }
 0xaa2   :  { %v979_v38 = vmul.f32 %v1949_v50, %v1945_v19 }
 0xaa3   :  { %1812 = vmatpush3.bf16.msra.mxu1 %v1899_v53 }
 0xaa4   :  { %v981_v51 = vpack.c.bf16 %v979_v38, %v979_v38  ;;  %1825 = vmatprep.subr.bf16.mxu1 %v2009_v15 }
 0xaa6   :  { %1806 = vmatmul.mubr.msk.bf16.vlgmr.msra.gmra.mxu0 %vm193_vm2, %v981_v51 }
 0xaa7   :  { %1821 = vmatprep.mubr.msk.bf16.mxu0 %vm2010_vm1, %v2009_v15  ;;  %1818 = vmatpush3.bf16.msra.mxu0 %v1900_v20 }
 0xaa8   :  { %1819 = vmatprep.subr.bf16.mxu0 %v2009_v15 }
 0xaab   :  { %1820 = vmatpush3.bf16.msra.mxu0 %v1901_v26 }
 0xaac   :  { %1833 = vmatprep.subr.bf16.mxu0 %v2009_v15 }
 0xb5e   :  { %v1024_v54 = vpop.f32.mrf.mxu1 }
 0xb60   :  { %v1801_v55 = vpop.f32.mrf.mxu1 }
 0xb62   :  { %v1027_v56 = vpop.f32.mrf.mxu1 }
 0xb63   :  { %v1630_v56 = vld [vmem:[%s2428_s10] ss:$0 sm:$0xff] }
 0xb64   :  { %v1802_v57 = vpop.f32.mrf.mxu1 }
 0xb66   :  { %v1072_v58 = vpop.f32.mrf.mxu0 }
 0xb67   :  { %v1891_v59 = vpack.i.bf16 %v1072_v58, %v1024_v54 }
 0xb68   :  { %v1807_v60 = vpop.f32.mrf.mxu0 }
 0xb69   :  { %1892 = vrot.lane.b32.xlu0 %v1891_v59, %s2023_s28 }
 0xb6a   :  { %v1075_v61 = vpop.f32.mrf.mxu0 }
 0xb6c   :  { %v1808_v62 = vpop.f32.mrf.mxu0 }
 0xbdb   :  { %v1893_v7 = vpop.permute.xlu0 %1892 }
 0xbdc   :  { %v1895_v10 = vunpack.i.h.bf16 %v1893_v7  ;;  %v1894_v11 = vunpack.i.l.bf16 %v1893_v7 }
 0xbde   :  { %v1109_v16 = vsel %vm1107_vm5, %v1106_v13, %v1895_v10  ;;  %v1108_v17 = vsel %vm1107_vm5, %v1105_v12, %v1894_v11 }
 0xbdf   :  { %v1110_v18 = vpack.c.bf16 %v1109_v16, %v1108_v17  ;;  %v1904_v17 = vld [vmem:[#allocation2 + $0x8] sm:$0xff]  }
 0xbe1   :  { %1814 = vmatmul.mubr.msk.bf16.vlgmr.msra.gmra.mxu1 %vm76_vm0, %v1110_v18  ;;  %v1905_v18 = vld [vmem:[#allocation2] sm:$0xff]  }
 0xbe2   :  { %1829 = vmatprep.mubr.msk.bf16.mxu1 %vm2010_vm1, %v2009_v15  ;;  %1826 = vmatpush3.bf16.msra.mxu1 %v1902_v33  ;;  %v1635_v33 = vld [vmem:[%s2430_s12] ss:$0 sm:$0xff] }
 0xbe3   :  { %1827 = vmatprep.subr.bf16.mxu1 %v2009_v15 }
 0xbe6   :  { %1828 = vmatpush3.bf16.msra.mxu1 %v1903_v34 }
 0xbe7   :  { %1841 = vmatprep.subr.bf16.mxu1 %v2009_v15 }
 0xca1   :  { %v1171_v22 = vpop.f32.mrf.mxu1 }
 0xca2   :  { %v1172_v24 = vadd.f32 %v1622_v30, %v1171_v22 }
 0xca3   :  { %v1815_v23 = vpop.f32.mrf.mxu1 }
 0xca4   :  { %v1178_v29 = vadd.f32 %v1172_v24, %v2124_v0  ;;  %v1626_v0 = vld [vmem:[%s2426_s8] ss:$0 sm:$0xff]  ;;  %s1982_s8 = scalar_lea.vmem %s1589_s1, 256 }
 0xca5   :  { %v1174_v25 = vpop.f32.mrf.mxu1  ;;  %p1983_p5 = scmp.ne.s32.totalorder %s1589_s1, %s1982_s8  ;;  %p1988_p7 = scmp.lt.s32.totalorder %s1982_s8, %s1982_s8 }
 0xca6   :  { %v1175_v27 = vadd.f32 %v1622_v30, %v1174_v25 }
 0xca7   :  { %v1816_v28 = vpop.f32.mrf.mxu1  ;;  %p1989_p8 = por %p1988_p7, %p1987_p6 }
 0xca8   :  { %v1179_v31 = vadd.f32 %v1175_v27, %v2129_v1  ;;  %v1634_v28 = vld [vmem:[%s2429_s11] ss:$0 sm:$0xff] }
 0xca9   :  { %p1990_p9 = pnand %p1989_p8, %p1983_p5 }
 0xcaa   :  { %v1180_v32 = vpack.c.bf16 %v1179_v31, %v1178_v29 }
 0xcac   :  { %1822 = vmatmul.mubr.msk.bf16.vlgmr.msra.gmra.mxu0 %vm76_vm0, %v1180_v32 }
 0xcad   :  { %1837 = vmatprep.mubr.msk.bf16.mxu0 %vm2010_vm1, %v2009_v15  ;;  %1834 = vmatpush3.bf16.msra.mxu0 %v1904_v17 }
 0xcae   :  { %1835 = vmatprep.subr.bf16.mxu0 %v2009_v15 }
 0xcb1   :  { %1836 = vmatpush3.bf16.msra.mxu0 %v1905_v18 }
 0xd6c   :  { %v1241_v1 = vpop.f32.mrf.mxu0 }
 0xd6d   :  { %v1242_v35 = vadd.f32 %v1626_v0, %v1241_v1 }
 0xd6e   :  { %v1823_v36 = vpop.f32.mrf.mxu0 }
 0xd6f   :  { %v1250_v37 = vmul.f32 0.044715, %v1242_v35  ;;  %v1248_v38 = vmul.f32 0.5, %v1242_v35  ;;  %v1906_v36 = vld [vmem:[%s2433_s15 + $0x38] sm:$0xff]  }
 0xd70   :  { %v1244_v39 = vpop.f32.mrf.mxu0 }
 0xd71   :  { %v1252_v40 = vmul.f32 %v1250_v37, %v1242_v35  ;;  %v1245_v42 = vadd.f32 %v1626_v0, %v1244_v39  ;;  %v1907_v37 = vld [vmem:[%s2433_s15 + $0x30] sm:$0xff]   ;;  %v1908_v39 = vld [vmem:[%s2433_s15 + $0x28] sm:$0xff]  }
 0xd72   :  { %v1824_v41 = vpop.f32.mrf.mxu0 }
 0xd73   :  { %v1254_v14 = vmul.f32 %v1252_v40, %v1242_v35  ;;  %v1251_v19 = vmul.f32 0.044715, %v1245_v42  ;;  %v1249_v51 = vmul.f32 0.5, %v1245_v42  ;;  %v1909_v40 = vld [vmem:[%s2433_s15 + $0x20] sm:$0xff]   ;;  %v1911_v41 = vld [vmem:[%s2433_s15 + $0x10] sm:$0xff]  }
 0xd75   :  { %v1256_v21 = vadd.f32 %v1254_v14, %v1242_v35  ;;  %v1253_v43 = vmul.f32 %v1251_v19, %v1245_v42  ;;  %v1912_v14 = vld [vmem:[%s2433_s15 + $0x8] sm:$0xff]   ;;  %v1913_v19 = vld [vmem:[%s2433_s15] sm:$0xff]  }
 0xd77   :  { %v1258_v44 = vmul.f32 0.7978846, %v1256_v21  ;;  %v1255_v45 = vmul.f32 %v1253_v43, %v1245_v42  ;;  %v1636_v21 = vld [vmem:[%s2432_s14] ss:$0 sm:$0xff] }
 0xd79   :  { %1950 = vtanh.f32 %v1258_v44  ;;  %v1257_v46 = vadd.f32 %v1255_v45, %v1245_v42  ;;  %v1910_v42 = vld [vmem:[%s2433_s15 + $0x18] sm:$0xff]  }
 0xd7b   :  { %v1259_v47 = vmul.f32 0.7978846, %v1257_v46 }
 0xd7d   :  { %1952 = vtanh.f32 %v1259_v47 }
 0xd86   :  { %v1951_v48 = vpop.eup %1950 }
 0xd87   :  { %v1262_v49 = vadd.f32 1.0, %v1951_v48 }
 0xd89   :  { %v1264_v53 = vmul.f32 %v1262_v49, %v1248_v38 }
 0xd8a   :  { %v1953_v50 = vpop.eup %1952 }
 0xd8b   :  { %v1263_v52 = vadd.f32 1.0, %v1953_v50 }
 0xd8d   :  { %v1265_v54 = vmul.f32 %v1263_v52, %v1249_v51 }
 0xd8f   :  { %v1266_v55 = vpack.c.bf16 %v1265_v54, %v1264_v53 }
 0xd91   :  { %1830 = vmatmul.mubr.msk.bf16.vlgmr.msra.gmra.mxu1 %vm76_vm0, %v1266_v55 }
 0xd92   :  { %1857 = vmatprep.mubr.msk.bf16.mxu1 %vm2010_vm1, %v2009_v15  ;;  %1842 = vmatpush3.bf16.msra.mxu1 %v1906_v36 }
 0xd93   :  { %1843 = vmatprep.subr.bf16.mxu1 %v2009_v15 }
 0xd96   :  { %1844 = vmatpush3.bf16.msra.mxu1 %v1907_v37 }
 0xd97   :  { %1845 = vmatprep.subr.bf16.mxu1 %v2009_v15 }
 0xd9a   :  { %1846 = vmatpush3.bf16.msra.mxu1 %v1908_v39 }
 0xd9b   :  { %1847 = vmatprep.subr.bf16.mxu1 %v2009_v15 }
 0xd9e   :  { %1848 = vmatpush3.bf16.msra.mxu1 %v1909_v40 }
 0xd9f   :  { %1849 = vmatprep.subr.bf16.mxu1 %v2009_v15 }
 0xda2   :  { %1850 = vmatpush3.bf16.msra.mxu1 %v1910_v42 }
 0xda3   :  { %1851 = vmatprep.subr.bf16.mxu1 %v2009_v15 }
 0xda6   :  { %1852 = vmatpush3.bf16.msra.mxu1 %v1911_v41 }
 0xda7   :  { %1853 = vmatprep.subr.bf16.mxu1 %v2009_v15 }
 0xdaa   :  { %1854 = vmatpush3.bf16.msra.mxu1 %v1912_v14 }
 0xdab   :  { %1855 = vmatprep.subr.bf16.mxu1 %v2009_v15 }
 0xdae   :  { %1856 = vmatpush3.bf16.msra.mxu1 %v1913_v19 }
 0xe51   :  { %v1327_v57 = vpop.f32.mrf.mxu1 }
 0xe52   :  { %v1328_v58 = vadd.f32 %v1630_v56, %v1327_v57 }
 0xe53   :  { %v1831_v59 = vpop.f32.mrf.mxu1 }
 0xe54   :  { %v2353_v60 = vadd.f32 %v1328_v58, %v1178_v29 }
 0xe55   :  { %v1330_v61 = vpop.f32.mrf.mxu1 }
 0xe56   :  { %v1331_v62 = vadd.f32 %v1630_v56, %v1330_v61  ;;  %v1338_v63 = vsel %vm76_vm0, %v2353_v60, 0.0 }
 0xe57   :  { %1339 = vadd.xlane.f32.xlu1 %v1338_v63  ;;  %v1832_v2 = vpop.f32.mrf.mxu1 }
 0xe58   :  { %v2357_v3 = vadd.f32 %v1331_v62, %v1179_v31 }
 0xe5a   :  { %v1341_v4 = vsel %vm76_vm0, %v2357_v3, 0.0 }
 0xe5b   :  { %1342 = vadd.xlane.f32.xlu0 %v1341_v4 }
 0xee0   :  { %v1340_v5 = vpop.xlane.xlu1 %1339 }
 0xee1   :  { %v1344_v6 = vmul.f32 0.03125, %v1340_v5 }
 0xee3   :  { %v1346_v7 = vsub.f32 %v2353_v60, %v1344_v6  ;;  %v1640_v6 = vld [vmem:[%s2434_s16] ss:$0 sm:$0xff] }
 0xee4   :  { %v1343_v8 = vpop.xlane.xlu0 %1342 }
 0xee5   :  { %v1345_v9 = vmul.f32 0.03125, %v1343_v8  ;;  %v1348_v10 = vmul.f32 %v1346_v7, %v1346_v7 }
 0xee7   :  { %v1347_v11 = vsub.f32 %v2357_v3, %v1345_v9  ;;  %v1350_v12 = vsel %vm76_vm0, %v1348_v10, 0.0 }
 0xee8   :  { %1351 = vadd.xlane.f32.xlu0 %v1350_v12 }
 0xee9   :  { %v1349_v13 = vmul.f32 %v1347_v11, %v1347_v11 }
 0xeeb   :  { %v1353_v16 = vsel %vm76_vm0, %v1349_v13, 0.0 }
 0xeec   :  { %1354 = vadd.xlane.f32.xlu0 %v1353_v16 }
 0xf71   :  { %v1352_v20 = vpop.xlane.xlu0 %1351 }
 0xf72   :  { %v1356_v26 = vmul.f32 0.03125, %v1352_v20 }
 0xf74   :  { %v1358_v30 = vadd.f32 1e-06, %v1356_v26 }
 0xf75   :  { %v1355_v22 = vpop.xlane.xlu0 %1354 }
 0xf76   :  { %1954 = vrsqrt.f32 %v1358_v30  ;;  %v1357_v23 = vmul.f32 0.03125, %v1355_v22 }
 0xf78   :  { %v1359_v24 = vadd.f32 1e-06, %v1357_v23 }
 0xf7a   :  { %1956 = vrsqrt.f32 %v1359_v24 }
 0xf83   :  { %v1955_v25 = vpop.eup %1954 }
 0xf84   :  { %v1362_v27 = vmul.f32 %v1955_v25, %v1346_v7 }
 0xf86   :  { %v1370_v32 = vmul.f32 %v1634_v28, %v1362_v27 }
 0xf87   :  { %v1957_v29 = vpop.eup %1956 }
 0xf88   :  { %v1363_v31 = vmul.f32 %v1957_v29, %v1347_v11  ;;  %v1378_v0 = vadd.f32 %v1635_v33, %v1370_v32 }
 0xf8a   :  { %v1371_v34 = vmul.f32 %v1634_v28, %v1363_v31 }
 0xf8c   :  { %v1379_v1 = vadd.f32 %v1635_v33, %v1371_v34 }
 0xf8e   :  { %v1380_v35 = vpack.c.bf16 %v1379_v1, %v1378_v0 }
 0xf90   :  { %1838 = vmatmul.mubr.msk.bf16.vlgmr.msra.gmra.mxu0 %vm76_vm0, %v1380_v35 }
0x1050   :  { %v1441_v43 = vpop.f32.mrf.mxu0 }
0x1051   :  { %v1442_v44 = vadd.f32 %v1636_v21, %v1441_v43 }
0x1052   :  { %v1839_v45 = vpop.f32.mrf.mxu0 }
0x1053   :  { %v1450_v46 = vmul.f32 0.044715, %v1442_v44  ;;  %v1448_v61 = vmul.f32 0.5, %v1442_v44 }
0x1054   :  { %v1444_v47 = vpop.f32.mrf.mxu0 }
0x1055   :  { %v1452_v48 = vmul.f32 %v1450_v46, %v1442_v44  ;;  %v1445_v49 = vadd.f32 %v1636_v21, %v1444_v47 }
0x1056   :  { %v1840_v50 = vpop.f32.mrf.mxu0 }
0x1057   :  { %v1454_v38 = vmul.f32 %v1452_v48, %v1442_v44  ;;  %v1451_v51 = vmul.f32 0.044715, %v1445_v49  ;;  %v1449_v62 = vmul.f32 0.5, %v1445_v49 }
0x1059   :  { %v1456_v52 = vadd.f32 %v1454_v38, %v1442_v44  ;;  %v1453_v53 = vmul.f32 %v1451_v51, %v1445_v49 }
0x105b   :  { %v1458_v54 = vmul.f32 0.7978846, %v1456_v52  ;;  %v1455_v55 = vmul.f32 %v1453_v53, %v1445_v49 }
0x105d   :  { %1958 = vtanh.f32 %v1458_v54  ;;  %v1457_v15 = vadd.f32 %v1455_v55, %v1445_v49 }
0x105f   :  { %v1459_v56 = vmul.f32 0.7978846, %v1457_v15 }
0x1061   :  { %1960 = vtanh.f32 %v1459_v56 }
0x106a   :  { %v1959_v57 = vpop.eup %1958 }
0x106b   :  { %v1462_v58 = vadd.f32 1.0, %v1959_v57 }
0x106d   :  { %v1464_v2 = vmul.f32 %v1462_v58, %v1448_v61 }
0x106e   :  { %v1961_v59 = vpop.eup %1960 }
0x106f   :  { %v1463_v63 = vadd.f32 1.0, %v1961_v59 }
0x1071   :  { %v1465_v4 = vmul.f32 %v1463_v63, %v1449_v62 }
0x1073   :  { %v1466_v5 = vpack.c.bf16 %v1465_v4, %v1464_v2 }
0x1075   :  { %1858 = vmatmul.mubr.bf16.vlgmr.msra.gmra.mxu1 %v1466_v5 }
0x1135   :  { %v1572_v7 = vpop.f32.mrf.mxu1 }
0x1136   :  { %v1573_v8 = vadd.f32 %v1640_v6, %v1572_v7 }
0x1137   :  { %v1859_v9 = vpop.f32.mrf.mxu1 }
0x1138   :  { %v1579_v10 = vadd.f32 %v1573_v8, %v2353_v60 }
0x1139   :  { %v1575_v11 = vpop.f32.mrf.mxu1 }
0x113a   :  { %1581 = vst.msk [vmem:[#allocation5] sm:$0xff] %vm76_vm0, %v1579_v10  ;;  %v1576_v12 = vadd.f32 %v1640_v6, %v1575_v11 }
0x113b   :  { %v1860_v13 = vpop.f32.mrf.mxu1 }
0x113c   :  { %v1580_v16 = vadd.f32 %v1576_v12, %v2357_v3 }
0x113e   :  { %1582 = vst.msk [vmem:[#allocation5 + $0x8] sm:$0xff] %vm76_vm0, %v1580_v16 }
0x113f   :  { %1993 = shalt.err (!%p1990_p9)
}
0x1140   :  { %s2025_s16 = smov 128  }
0x1141   :  { %1594 = dma.vmem_to_hbm [thread:$0]  %s1589_s1, 256, %s2435_s17, [#allocation4], %s2025_s16, %s2025_s16, %s2021_s22  }
0x1142   :  { %2004 = dma.done.wait [#allocation4], 256  }
0x1143   :  { %2005 = vsyncadd [#allocation4], 4294967040 }
0x1144   :  { %1598 = vsyncpa [#allocation3], 1 }
0x1145   :  { %1599 = vsyncpa [#allocation4], 1 }

</bundles_post_ra>
